<compile_context>
chip_gen: v6e
topology: v6e:2x2x1
jax: 0.10.0
libtpu: 0.0.40
codegen_flags: <defaults>
</compile_context>

<pallas_src>
import math

import jax
import jax.numpy as jnp
from jax.experimental import pallas as pl
from jax.experimental.pallas import tpu as pltpu

# ---------------- config ----------------
B, S, H = 2, 8, 32
N = B * S
NUM_EXPERTS = 4
MAX_HOPS = 2
K_DIM = 16                 # knowledge_embedding_dim
MAX_K_ITEMS = 4            # max_knowledge_items
NUM_ENTITIES = 3           # fallback knowledge graph: dog / cat / animal
EPS = 1e-5

E = NUM_EXPERTS
EH = 2 * H                 # expert hidden (64)
FH = 4 * H                 # ffn hidden (128)
CH = 2 * H                 # corrector hidden (64)

W1F_COLS = E * EH + E      # [expert-1 hiddens | router logits]   = 260
WEXP_COLS = E * EH + H     # [rw expansion | routed expert-2 bias] = 288
WVC1_COLS = H + CH         # [verifier hidden | corrector hidden]  = 96
WVC2_COLS = H + 1          # [corrections | verification logit]    = 33

# ---------------- packed parameter slab layouts (dense, bf16) ----------------
NARROW_LANES = 128

_NARROW_MATS = [
    ("w_in", (H, H)), ("w2f", (E * EH, H)), ("wf1", (H, FH)), ("wf2", (FH, H)),
    ("wvc1", (H, WVC1_COLS)), ("wvc2", (WVC1_COLS, WVC2_COLS)), ("w_out", (H, H)),
]
NARROW_MAT_LAYOUT = {}
_r = 0
for _n, _s in _NARROW_MATS:
    NARROW_MAT_LAYOUT[_n] = (_r, _s)
    _r += -(-_s[0] // 16) * 16          # 16-row (bf16 sublane tile) alignment

NVEC_ROW0 = _r                          # one 16-row block for all (1, C<=128) vectors
NVEC_ROWS = 16
NARROW_VEC_IDX = {"b_in": 0, "bf1": 1, "bf2": 2, "g_ffn": 3, "b_ffn": 4,
                  "bvc1": 5, "bvc2": 6, "g_fin": 7, "b_fin": 8,
                  "b_out": 9, "g_ln": 10, "b_ln": 11}
NARROW_VEC_COLS = {"b_in": H, "bf1": FH, "bf2": H, "g_ffn": H, "b_ffn": H,
                   "bvc1": WVC1_COLS, "bvc2": WVC2_COLS, "g_fin": H, "b_fin": H,
                   "b_out": H, "g_ln": H, "b_ln": H}
NARROW_ROWS = NVEC_ROW0 + NVEC_ROWS     # 624

WIDE_LANES = WEXP_COLS                  # 288 (widest wide entry)
W1F_ROW0 = 0                            # (32, 260)
WEXP_ROW0 = 32                          # (4, 288)
B1F_ROW = 36                            # (1, 260)
WIDE_ROWS = 48

# ---------------- lane-dense output slab layout ----------------
SIDE_LANES = 128
# per-hop row h: lanes [0:H) hop_state, [H:H+E) routing weights, [H+E] verification
# row MAX_HOPS:  lanes [0:H) final module output
SIDE_ROWS = MAX_HOPS + 1

# ---------------- cost estimate (advisory) ----------------
_MM_FLOPS_PER_HOP = 2 * N * (H * W1F_COLS + E * WEXP_COLS + (E * EH) * H
                             + H * FH + FH * H + H * WVC1_COLS
                             + WVC1_COLS * WVC2_COLS)
_FLOPS = 2 * (2 * N * H * H) + MAX_HOPS * (_MM_FLOPS_PER_HOP + 30 * N * H)
_TRANSCENDENTALS = MAX_HOPS * N * (E * EH + FH + WVC1_COLS + E + 6) + 8 * N
_BYTES = (N * H * 4 + NARROW_ROWS * NARROW_LANES * 2
          + WIDE_ROWS * WIDE_LANES * 2 + SIDE_ROWS * N * SIDE_LANES * 4)


# ---------------- math helpers ----------------
def _gelu_tanh(x):
    # tanh-form GELU (EUP-friendly); |diff vs exact erf GELU| <~ 3e-3,
    # well inside the bf16-matmul tolerance used for this kernel.
    c = math.sqrt(2.0 / math.pi)
    return 0.5 * x * (1.0 + jnp.tanh(c * (x + 0.044715 * x * x * x)))


def _layernorm(x, g, b):
    m = jnp.mean(x, axis=-1, keepdims=True)
    v = jnp.mean((x - m) * (x - m), axis=-1, keepdims=True)
    return (x - m) * jax.lax.rsqrt(v + EPS) * g + b


def _mm(a, w_bf16):
    """bf16 x bf16 matmul with f32 accumulation on the MXU."""
    return jnp.dot(a.astype(jnp.bfloat16), w_bf16,
                   preferred_element_type=jnp.float32)


# ---------------- the Pallas kernel (hot path) ----------------
def knowledge_reasoning_kernel(x_ref, np_ref, wp_ref, side_ref):
    x = x_ref[...]                                                   # (N, H) f32

    # ---- hoisted parameter reads: each weight/bias is read exactly once ----
    def mat(name):
        r0, (nr, nc) = NARROW_MAT_LAYOUT[name]
        return np_ref[r0:r0 + nr, 0:nc]                              # bf16

    w_in = mat("w_in"); w2f = mat("w2f")
    wf1 = mat("wf1"); wf2 = mat("wf2")
    wvc1 = mat("wvc1"); wvc2 = mat("wvc2")
    w_out = mat("w_out")

    nvec = np_ref[NVEC_ROW0:NVEC_ROW0 + NVEC_ROWS, :].astype(jnp.float32)

    def vec(name):
        return nvec[NARROW_VEC_IDX[name], 0:NARROW_VEC_COLS[name]]

    b_in = vec("b_in"); bf1 = vec("bf1"); bf2 = vec("bf2")
    g_ffn = vec("g_ffn"); b_ffn = vec("b_ffn")
    bvc1 = vec("bvc1"); bvc2 = vec("bvc2")
    g_fin = vec("g_fin"); b_fin = vec("b_fin")
    b_out = vec("b_out"); g_ln = vec("g_ln"); b_ln = vec("b_ln")

    w1f = wp_ref[W1F_ROW0:W1F_ROW0 + H, 0:W1F_COLS]                  # (32,260) bf16
    wexp = wp_ref[WEXP_ROW0:WEXP_ROW0 + E, 0:WEXP_COLS]              # (4,288)  bf16
    b1f = wp_ref[B1F_ROW:B1F_ROW + 1, 0:W1F_COLS].astype(jnp.float32)

    pad_hop = jnp.zeros((N, SIDE_LANES - (H + E + 1)), jnp.float32)  # (N, 91)
    pad_out = jnp.zeros((N, SIDE_LANES - H), jnp.float32)            # (N, 96)

    cur = _mm(x, w_in) + b_in                                        # input projection

    for hop in range(MAX_HOPS):                                      # static unroll
        cur_start = cur

        # ---- KnowledgeRouter: router + all 4 expert first layers (1 matmul) ----
        fused1 = _mm(cur, w1f) + b1f                                 # (N, 260)
        h1 = _gelu_tanh(fused1[:, 0:E * EH])                         # (N, 256)
        logits = fused1[:, E * EH:E * EH + E]                        # (N, 4)
        lmax = jnp.max(logits, axis=-1, keepdims=True)
        ex = jnp.exp(logits - lmax)
        rw = ex * pl.reciprocal(jnp.sum(ex, axis=-1, keepdims=True), approx=True)

        # routing-weight expansion + routed expert-2 bias: one tiny matmul
        rexp = _mm(rw, wexp)                                         # (N, 288)
        scale = rexp[:, 0:E * EH]
        bias_mix = rexp[:, E * EH:E * EH + H]

        # all expert second layers as one 256-contraction matmul
        attn = _mm(h1 * scale, w2f) + bias_mix                       # (N, 32)

        # ---- FFN + residual LayerNorm ----
        f = _gelu_tanh(_mm(attn, wf1) + bf1)
        f = _mm(f, wf2) + bf2
        f = _layernorm(f + attn, g_ffn, b_ffn)

        # ---- KnowledgeVerifier: verifier + corrector fused (2 matmuls) ----
        hvc = _gelu_tanh(_mm(f, wvc1) + bvc1)
        vc = _mm(hvc, wvc2) + bvc2                                   # (N, 33)
        corr = vc[:, 0:H]
        v = pl.reciprocal(1.0 + jnp.exp(-vc[:, H:H + 1]), approx=True)

        cur = f * v + corr * (1.0 - v)

        # one dense, fully-initialized 128-lane row per hop
        side_ref[hop] = jnp.concatenate([cur_start, rw, v, pad_hop], axis=-1)

    # ---- final_norm -> output_projection -> residual layer_norm ----
    o = _layernorm(cur, g_fin, b_fin)
    o = _mm(o, w_out) + b_out
    o = _layernorm(o + x, g_ln, b_ln)
    side_ref[MAX_HOPS] = jnp.concatenate([o, pad_out], axis=-1)


def run_reasoning_kernel(x_flat, narrow_slab, wide_slab):
    vmem = pl.BlockSpec(memory_space=pltpu.MemorySpace.VMEM)
    return pl.pallas_call(
        knowledge_reasoning_kernel,
        out_shape=jax.ShapeDtypeStruct((SIDE_ROWS, N, SIDE_LANES), jnp.float32),
        in_specs=[vmem, vmem, vmem],
        out_specs=vmem,
        cost_estimate=pl.CostEstimate(flops=_FLOPS,
                                      transcendentals=_TRANSCENDENTALS,
                                      bytes_accessed=_BYTES),
    )(x_flat, narrow_slab, wide_slab)


# ---------------- parameter slab packing (host side, runs once) ----------------
def pack_param_slabs(p):
    we1_cat = jnp.concatenate([p["we1"][e] for e in range(E)], axis=1)   # (32, 256)
    be1_cat = p["be1"].reshape(1, E * EH)
    w1f = jnp.concatenate([we1_cat, p["wr"]], axis=1)                    # (32, 260)
    b1f = jnp.concatenate([be1_cat, p["br"]], axis=1)                    # (1, 260)
    expand = jnp.repeat(jnp.eye(E, dtype=jnp.float32), EH, axis=1)       # (4, 256)
    wexp = jnp.concatenate([expand, p["be2"].reshape(E, H)], axis=1)     # (4, 288)

    wvc2 = jnp.zeros((WVC1_COLS, WVC2_COLS), jnp.float32)
    wvc2 = wvc2.at[0:H, H:H + 1].set(p["wv2"])                           # verifier L2
    wvc2 = wvc2.at[H:H + CH, 0:H].set(p["wc2"])                          # corrector L2

    mats = {
        "w_in": p["w_in"], "w2f": p["we2"].reshape(E * EH, H),
        "wf1": p["wf1"], "wf2": p["wf2"],
        "wvc1": jnp.concatenate([p["wv1"], p["wc1"]], axis=1),
        "wvc2": wvc2, "w_out": p["w_out"],
    }
    vecs = {
        "b_in": p["b_in"], "bf1": p["bf1"], "bf2": p["bf2"],
        "g_ffn": p["g_ffn"], "b_ffn": p["b_ffn"],
        "bvc1": jnp.concatenate([p["bv1"], p["bc1"]], axis=1),
        "bvc2": jnp.concatenate([p["bc2"], p["bv2"]], axis=1),
        "g_fin": p["g_fin"], "b_fin": p["b_fin"],
        "b_out": p["b_out"], "g_ln": p["g_ln"], "b_ln": p["b_ln"],
    }

    narrow = jnp.zeros((NARROW_ROWS, NARROW_LANES), jnp.float32)
    for name, (r0, (nr, nc)) in NARROW_MAT_LAYOUT.items():
        narrow = narrow.at[r0:r0 + nr, 0:nc].set(mats[name].astype(jnp.float32))
    for name, idx in NARROW_VEC_IDX.items():
        v = vecs[name].reshape(-1).astype(jnp.float32)
        narrow = narrow.at[NVEC_ROW0 + idx, 0:v.shape[0]].set(v)

    wide = jnp.zeros((WIDE_ROWS, WIDE_LANES), jnp.float32)
    wide = wide.at[W1F_ROW0:W1F_ROW0 + H, 0:W1F_COLS].set(w1f)
    wide = wide.at[WEXP_ROW0:WEXP_ROW0 + E, 0:WEXP_COLS].set(wexp)
    wide = wide.at[B1F_ROW, 0:W1F_COLS].set(b1f.reshape(-1))

    return narrow.astype(jnp.bfloat16), wide.astype(jnp.bfloat16)


# ---------------- KnowledgeRetriever (plain-JAX glue; diagnostic only) ----------------
# TODO(synk): the dict/JSON knowledge-graph walk + per-token torch.topk gather is
# inherently host-side glue; implemented vectorized in plain JAX (same jit), not in kernel.
def retrieve_knowledge(projected, rparams):
    q = jnp.einsum("bsh,hk->bsk", projected, rparams["wq"]) + rparams["bq"]  # (B,S,K)
    ent = rparams["entity_emb"]                                              # (NE,K)
    q_exp = jnp.broadcast_to(q[:, :, None, :], (B, S, NUM_ENTITIES, K_DIM))
    e_exp = jnp.broadcast_to(ent[None, None], (B, S, NUM_ENTITIES, K_DIM))
    combined = jnp.concatenate([q_exp, e_exp], axis=-1)                      # (B,S,NE,2K)
    h = jax.nn.gelu(combined @ rparams["ws1"] + rparams["bs1"], approximate=False)
    scores = (h @ rparams["ws2"] + rparams["bs2"])[..., 0]                   # (B,S,NE)
    k = min(MAX_K_ITEMS, NUM_ENTITIES)
    top_scores, top_idx = jax.lax.top_k(scores, k)
    gathered = ent[top_idx]                                                  # (B,S,k,K)
    k_emb = jnp.zeros((B, S, MAX_K_ITEMS, K_DIM), jnp.float32).at[:, :, :k, :].set(gathered)
    k_mask = jnp.zeros((B, S, MAX_K_ITEMS), jnp.float32).at[:, :, :k].set(1.0)
    k_scores = jnp.zeros((B, S, MAX_K_ITEMS), jnp.float32).at[:, :, :k].set(top_scores)
    return k_emb, k_mask, k_scores


# ---------------- full module forward (one jit => one dispatch chain) ----------------
@jax.jit
def knowledge_reasoning_forward(x, narrow_slab, wide_slab, rparams):
    x_flat = x.reshape(N, H)
    slab = run_reasoning_kernel(x_flat, narrow_slab, wide_slab)

    out = slab[MAX_HOPS, :, 0:H].reshape(B, S, H)
    hop_states = [slab[h, :, 0:H].reshape(B, S, H) for h in range(MAX_HOPS)]
    routing_weights = [slab[h, :, H:H + E].reshape(B, S, NUM_EXPERTS)
                       for h in range(MAX_HOPS)]
    verification_scores = [slab[h, :, H + E:H + E + 1].reshape(B, S, 1)
                           for h in range(MAX_HOPS)]

    # retriever runs on the projected input; hop_states[0] IS that projection
    # (no duplicated input-projection matmul in the wrapper).
    k_emb, k_mask, k_scores = retrieve_knowledge(hop_states[0], rparams)

    reasoning_info = {
        "hop_depths": [],
        "verification_scores": verification_scores,
        "routing_weights": routing_weights,
        "knowledge_scores": k_scores,
        "hop_states": hop_states,
        "knowledge_embeddings": k_emb,
        "knowledge_mask": k_mask,
    }
    return out, reasoning_info


# ---------------- plain-JAX f32 reference (sanity check of fusion/packing) ----------------
def _sigmoid(x):
    return 1.0 / (1.0 + jnp.exp(-x))


def _reference_forward(x, p):
    gelu = lambda t: jax.nn.gelu(t, approximate=False)     # exact-erf GELU (PyTorch default)
    xf = x.reshape(N, H)
    cur = xf @ p["w_in"] + p["b_in"]
    hop_states, rws, vss = [], [], []
    for _hop in range(MAX_HOPS):
        hop_states.append(cur)
        rw = jax.nn.softmax(cur @ p["wr"] + p["br"], axis=-1)
        rws.append(rw)
        mixed = jnp.zeros_like(cur)
        for e in range(NUM_EXPERTS):
            h1 = gelu(cur @ p["we1"][e] + p["be1"][e])
            mixed = mixed + (h1 @ p["we2"][e] + p["be2"][e]) * rw[:, e:e + 1]
        f = gelu(mixed @ p["wf1"] + p["bf1"]) @ p["wf2"] + p["bf2"]
        f = _layernorm(f + mixed, p["g_ffn"], p["b_ffn"])
        v = _sigmoid(gelu(f @ p["wv1"] + p["bv1"]) @ p["wv2"] + p["bv2"])
        c = gelu(f @ p["wc1"] + p["bc1"]) @ p["wc2"] + p["bc2"]
        vss.append(v)
        cur = f * v + c * (1.0 - v)
    o = _layernorm(cur, p["g_fin"], p["b_fin"]) @ p["w_out"] + p["b_out"]
    o = _layernorm(o + xf, p["g_ln"], p["b_ln"])
    return o, hop_states, rws, vss


# ---------------- deterministic parameter init ----------------
def init_params(key):
    ks = iter(jax.random.split(key, 64))

    def w(shape, scale=0.05):
        return (scale * jax.random.normal(next(ks), shape)).astype(jnp.float32)

    def b(shape):
        return (0.01 * jax.random.normal(next(ks), shape)).astype(jnp.float32)

    p = {
        "w_in": w((H, H)), "b_in": b((1, H)),
        "wr": w((H, NUM_EXPERTS)), "br": b((1, NUM_EXPERTS)),
        "we1": w((NUM_EXPERTS, H, 2 * H)), "be1": b((NUM_EXPERTS, 1, 2 * H)),
        "we2": w((NUM_EXPERTS, 2 * H, H)), "be2": b((NUM_EXPERTS, 1, H)),
        "wf1": w((H, 4 * H)), "bf1": b((1, 4 * H)),
        "wf2": w((4 * H, H)), "bf2": b((1, H)),
        "g_ffn": jnp.ones((1, H), jnp.float32), "b_ffn": jnp.zeros((1, H), jnp.float32),
        "wv1": w((H, H)), "bv1": b((1, H)),
        "wv2": w((H, 1)), "bv2": b((1, 1)),
        "wc1": w((H, 2 * H)), "bc1": b((1, 2 * H)),
        "wc2": w((2 * H, H)), "bc2": b((1, H)),
        "g_fin": jnp.ones((1, H), jnp.float32), "b_fin": jnp.zeros((1, H), jnp.float32),
        "w_out": w((H, H)), "b_out": b((1, H)),
        "g_ln": jnp.ones((1, H), jnp.float32), "b_ln": jnp.zeros((1, H), jnp.float32),
    }
    rp = {
        "wq": w((H, K_DIM)), "bq": b((K_DIM,)),
        "entity_emb": w((NUM_ENTITIES, K_DIM), scale=0.1),
        "ws1": w((2 * K_DIM, K_DIM)), "bs1": b((K_DIM,)),
        "ws2": w((K_DIM, 1)), "bs2": b((1,)),
    }
    return p, rp


if __name__ == "__main__":
    key = jax.random.PRNGKey(0)
    k_param, k_x = jax.random.split(key)
    params, rparams = init_params(k_param)
    narrow_slab, wide_slab = pack_param_slabs(params)
    x = jax.random.normal(k_x, (B, S, H), dtype=jnp.float32)

    out, info = knowledge_reasoning_forward(x, narrow_slab, wide_slab, rparams)
    jax.block_until_ready(out)

    # shape checks
    assert out.shape == (B, S, H)
    assert info["knowledge_scores"].shape == (B, S, MAX_K_ITEMS)
    assert len(info["hop_states"]) == MAX_HOPS
    assert len(info["routing_weights"]) == MAX_HOPS
    assert len(info["verification_scores"]) == MAX_HOPS

    # numerical sanity check of the fused/packed bf16-matmul kernel against the
    # exact-f32 unfused reference.  Tolerance reflects the bf16 matmul precision
    # (per perf review: the module-level tolerance class licenses bf16 weights).
    ref_o, ref_hops, ref_rw, ref_vs = _reference_forward(x, params)
    tight = dict(atol=5e-3, rtol=5e-3)    # single bf16 matmul (input projection)
    loose = dict(atol=5e-2, rtol=5e-2)    # full 2-hop bf16 chain vs exact f32
    assert jnp.allclose(info["hop_states"][0].reshape(N, H), ref_hops[0], **tight)
    assert jnp.allclose(out.reshape(N, H), ref_o, **loose)
    assert jnp.allclose(info["hop_states"][1].reshape(N, H), ref_hops[1], **loose)
    assert jnp.allclose(info["routing_weights"][1].reshape(N, NUM_EXPERTS), ref_rw[1], **loose)
    assert jnp.allclose(info["verification_scores"][0].reshape(N, 1), ref_vs[0], **loose)
    # structural invariants
    assert jnp.allclose(jnp.sum(info["routing_weights"][0], axis=-1), 1.0, atol=1e-2)
    assert bool((info["verification_scores"][0] > 0.0).all())
    assert bool((info["verification_scores"][0] < 1.0).all())
    assert bool(jnp.isfinite(out).all())

    print("KERNEL_OK")
</pallas_src>

<mosaic_0001>
module attributes {stable_mosaic.version = 11 : i64} {
  func.func @knowledge_reasoning_kernel(%arg0: memref<16x32xf32, #tpu.memory_space<vmem>>, %arg1: memref<624x128xbf16, #tpu.memory_space<vmem>>, %arg2: memref<48x288xbf16, #tpu.memory_space<vmem>>, %arg3: memref<3x16x128xf32, #tpu.memory_space<vmem>>) attributes {dimension_semantics = [], scalar_prefetch = 0 : i64, scratch_operands = 0 : i64, tpu.core_type = #tpu.core_type<tc>} {
    %c0 = arith.constant 0 : index
    %c0_0 = arith.constant 0 : index
    %0 = vector.load %arg0[%c0, %c0_0] : memref<16x32xf32, #tpu.memory_space<vmem>>, vector<16x32xf32>
    %c0_1 = arith.constant 0 : index
    %c0_2 = arith.constant 0 : index
    %1 = vector.load %arg1[%c0_1, %c0_2] : memref<624x128xbf16, #tpu.memory_space<vmem>>, vector<32x32xbf16>
    %c32 = arith.constant 32 : index
    %c0_3 = arith.constant 0 : index
    %2 = vector.load %arg1[%c32, %c0_3] : memref<624x128xbf16, #tpu.memory_space<vmem>>, vector<256x32xbf16>
    %c288 = arith.constant 288 : index
    %c0_4 = arith.constant 0 : index
    %3 = vector.load %arg1[%c288, %c0_4] : memref<624x128xbf16, #tpu.memory_space<vmem>>, vector<32x128xbf16>
    %c320 = arith.constant 320 : index
    %c0_5 = arith.constant 0 : index
    %4 = vector.load %arg1[%c320, %c0_5] : memref<624x128xbf16, #tpu.memory_space<vmem>>, vector<128x32xbf16>
    %c448 = arith.constant 448 : index
    %c0_6 = arith.constant 0 : index
    %5 = vector.load %arg1[%c448, %c0_6] : memref<624x128xbf16, #tpu.memory_space<vmem>>, vector<32x96xbf16>
    %c480 = arith.constant 480 : index
    %c0_7 = arith.constant 0 : index
    %6 = vector.load %arg1[%c480, %c0_7] : memref<624x128xbf16, #tpu.memory_space<vmem>>, vector<96x33xbf16>
    %c576 = arith.constant 576 : index
    %c0_8 = arith.constant 0 : index
    %7 = vector.load %arg1[%c576, %c0_8] : memref<624x128xbf16, #tpu.memory_space<vmem>>, vector<32x32xbf16>
    %c608 = arith.constant 608 : index
    %c0_9 = arith.constant 0 : index
    %8 = vector.load %arg1[%c608, %c0_9] : memref<624x128xbf16, #tpu.memory_space<vmem>>, vector<16x128xbf16>
    %9 = arith.extf %8 : vector<16x128xbf16> to vector<16x128xf32>
    %10 = vector.extract_strided_slice %9 {offsets = [0, 0], sizes = [1, 32], strides = [1, 1]} : vector<16x128xf32> to vector<1x32xf32>
    %11 = vector.shape_cast %10 : vector<1x32xf32> to vector<32xf32>
    %12 = vector.extract_strided_slice %9 {offsets = [1, 0], sizes = [1, 128], strides = [1, 1]} : vector<16x128xf32> to vector<1x128xf32>
    %13 = vector.shape_cast %12 : vector<1x128xf32> to vector<128xf32>
    %14 = vector.extract_strided_slice %9 {offsets = [2, 0], sizes = [1, 32], strides = [1, 1]} : vector<16x128xf32> to vector<1x32xf32>
    %15 = vector.shape_cast %14 : vector<1x32xf32> to vector<32xf32>
    %16 = vector.extract_strided_slice %9 {offsets = [3, 0], sizes = [1, 32], strides = [1, 1]} : vector<16x128xf32> to vector<1x32xf32>
    %17 = vector.shape_cast %16 : vector<1x32xf32> to vector<32xf32>
    %18 = vector.extract_strided_slice %9 {offsets = [4, 0], sizes = [1, 32], strides = [1, 1]} : vector<16x128xf32> to vector<1x32xf32>
    %19 = vector.shape_cast %18 : vector<1x32xf32> to vector<32xf32>
    %20 = vector.extract_strided_slice %9 {offsets = [5, 0], sizes = [1, 96], strides = [1, 1]} : vector<16x128xf32> to vector<1x96xf32>
    %21 = vector.shape_cast %20 : vector<1x96xf32> to vector<96xf32>
    %22 = vector.extract_strided_slice %9 {offsets = [6, 0], sizes = [1, 33], strides = [1, 1]} : vector<16x128xf32> to vector<1x33xf32>
    %23 = vector.shape_cast %22 : vector<1x33xf32> to vector<33xf32>
    %24 = vector.extract_strided_slice %9 {offsets = [7, 0], sizes = [1, 32], strides = [1, 1]} : vector<16x128xf32> to vector<1x32xf32>
    %25 = vector.shape_cast %24 : vector<1x32xf32> to vector<32xf32>
    %26 = vector.extract_strided_slice %9 {offsets = [8, 0], sizes = [1, 32], strides = [1, 1]} : vector<16x128xf32> to vector<1x32xf32>
    %27 = vector.shape_cast %26 : vector<1x32xf32> to vector<32xf32>
    %28 = vector.extract_strided_slice %9 {offsets = [9, 0], sizes = [1, 32], strides = [1, 1]} : vector<16x128xf32> to vector<1x32xf32>
    %29 = vector.shape_cast %28 : vector<1x32xf32> to vector<32xf32>
    %30 = vector.extract_strided_slice %9 {offsets = [10, 0], sizes = [1, 32], strides = [1, 1]} : vector<16x128xf32> to vector<1x32xf32>
    %31 = vector.shape_cast %30 : vector<1x32xf32> to vector<32xf32>
    %32 = vector.extract_strided_slice %9 {offsets = [11, 0], sizes = [1, 32], strides = [1, 1]} : vector<16x128xf32> to vector<1x32xf32>
    %33 = vector.shape_cast %32 : vector<1x32xf32> to vector<32xf32>
    %c0_10 = arith.constant 0 : index
    %c0_11 = arith.constant 0 : index
    %34 = vector.load %arg2[%c0_10, %c0_11] : memref<48x288xbf16, #tpu.memory_space<vmem>>, vector<32x260xbf16>
    %c32_12 = arith.constant 32 : index
    %c0_13 = arith.constant 0 : index
    %35 = vector.load %arg2[%c32_12, %c0_13] : memref<48x288xbf16, #tpu.memory_space<vmem>>, vector<4x288xbf16>
    %c36 = arith.constant 36 : index
    %c0_14 = arith.constant 0 : index
    %36 = vector.load %arg2[%c36, %c0_14] : memref<48x288xbf16, #tpu.memory_space<vmem>>, vector<1x260xbf16>
    %37 = arith.extf %36 : vector<1x260xbf16> to vector<1x260xf32>
    %cst = arith.constant 0.000000e+00 : f32
    %38 = vector.broadcast %cst : f32 to vector<16x91xf32>
    %cst_15 = arith.constant 0.000000e+00 : f32
    %39 = vector.broadcast %cst_15 : f32 to vector<16x96xf32>
    %40 = arith.truncf %0 : vector<16x32xf32> to vector<16x32xbf16>
    %cst_16 = arith.constant dense<0.000000e+00> : vector<16x32xf32>
    %41 = tpu.matmul %40, %1, %cst_16 {dimension_numbers = #tpu.dot_dimension_numbers<[1], [0], [0], [1], [0, 0, 1, 1], [], []>} : vector<16x32xbf16>, vector<32x32xbf16>, vector<16x32xf32> -> vector<16x32xf32>
    %42 = vector.shape_cast %11 : vector<32xf32> to vector<1x32xf32>
    %43 = vector.broadcast %42 : vector<1x32xf32> to vector<16x32xf32>
    %44 = arith.addf %41, %43 : vector<16x32xf32>
    %45 = arith.truncf %44 : vector<16x32xf32> to vector<16x32xbf16>
    %cst_17 = arith.constant dense<0.000000e+00> : vector<16x260xf32>
    %46 = tpu.matmul %45, %34, %cst_17 {dimension_numbers = #tpu.dot_dimension_numbers<[1], [0], [0], [1], [0, 0, 1, 1], [], []>} : vector<16x32xbf16>, vector<32x260xbf16>, vector<16x260xf32> -> vector<16x260xf32>
    %47 = vector.broadcast %37 : vector<1x260xf32> to vector<16x260xf32>
    %48 = arith.addf %46, %47 : vector<16x260xf32>
    %49 = vector.extract_strided_slice %48 {offsets = [0, 0], sizes = [16, 256], strides = [1, 1]} : vector<16x260xf32> to vector<16x256xf32>
    %cst_18 = arith.constant 5.000000e-01 : f32
    %50 = vector.broadcast %cst_18 : f32 to vector<16x256xf32>
    %51 = arith.mulf %50, %49 : vector<16x256xf32>
    %cst_19 = arith.constant 4.471500e-02 : f32
    %52 = vector.broadcast %cst_19 : f32 to vector<16x256xf32>
    %53 = arith.mulf %52, %49 : vector<16x256xf32>
    %54 = arith.mulf %53, %49 : vector<16x256xf32>
    %55 = arith.mulf %54, %49 : vector<16x256xf32>
    %56 = arith.addf %49, %55 : vector<16x256xf32>
    %cst_20 = arith.constant 0.797884583 : f32
    %57 = vector.broadcast %cst_20 : f32 to vector<16x256xf32>
    %58 = arith.mulf %57, %56 : vector<16x256xf32>
    %59 = math.tanh %58 : vector<16x256xf32>
    %cst_21 = arith.constant 1.000000e+00 : f32
    %60 = vector.broadcast %cst_21 : f32 to vector<16x256xf32>
    %61 = arith.addf %60, %59 : vector<16x256xf32>
    %62 = arith.mulf %51, %61 : vector<16x256xf32>
    %63 = vector.extract_strided_slice %48 {offsets = [0, 256], sizes = [16, 4], strides = [1, 1]} : vector<16x260xf32> to vector<16x4xf32>
    %cst_22 = arith.constant dense<0xFF800000> : vector<16xf32>
    %64 = vector.multi_reduction <maximumf>, %63, %cst_22 [1] : vector<16x4xf32> to vector<16xf32>
    %65 = vector.shape_cast %64 : vector<16xf32> to vector<16x1xf32>
    %66 = vector.broadcast %65 : vector<16x1xf32> to vector<16x4xf32>
    %67 = arith.subf %63, %66 : vector<16x4xf32>
    %68 = math.exp %67 : vector<16x4xf32>
    %cst_23 = arith.constant dense<0.000000e+00> : vector<16xf32>
    %69 = vector.multi_reduction <add>, %68, %cst_23 [1] : vector<16x4xf32> to vector<16xf32>
    %70 = vector.shape_cast %69 : vector<16xf32> to vector<16x1xf32>
    %71 = tpu.reciprocal %70 {approx = true} : vector<16x1xf32> -> vector<16x1xf32>
    %72 = vector.broadcast %71 : vector<16x1xf32> to vector<16x4xf32>
    %73 = arith.mulf %68, %72 : vector<16x4xf32>
    %74 = arith.truncf %73 : vector<16x4xf32> to vector<16x4xbf16>
    %cst_24 = arith.constant dense<0.000000e+00> : vector<16x288xf32>
    %75 = tpu.matmul %74, %35, %cst_24 {dimension_numbers = #tpu.dot_dimension_numbers<[1], [0], [0], [1], [0, 0, 1, 1], [], []>} : vector<16x4xbf16>, vector<4x288xbf16>, vector<16x288xf32> -> vector<16x288xf32>
    %76 = vector.extract_strided_slice %75 {offsets = [0, 0], sizes = [16, 256], strides = [1, 1]} : vector<16x288xf32> to vector<16x256xf32>
    %77 = vector.extract_strided_slice %75 {offsets = [0, 256], sizes = [16, 32], strides = [1, 1]} : vector<16x288xf32> to vector<16x32xf32>
    %78 = arith.mulf %62, %76 : vector<16x256xf32>
    %79 = arith.truncf %78 : vector<16x256xf32> to vector<16x256xbf16>
    %cst_25 = arith.constant dense<0.000000e+00> : vector<16x32xf32>
    %80 = tpu.matmul %79, %2, %cst_25 {dimension_numbers = #tpu.dot_dimension_numbers<[1], [0], [0], [1], [0, 0, 1, 1], [], []>} : vector<16x256xbf16>, vector<256x32xbf16>, vector<16x32xf32> -> vector<16x32xf32>
    %81 = arith.addf %80, %77 : vector<16x32xf32>
    %82 = arith.truncf %81 : vector<16x32xf32> to vector<16x32xbf16>
    %cst_26 = arith.constant dense<0.000000e+00> : vector<16x128xf32>
    %83 = tpu.matmul %82, %3, %cst_26 {dimension_numbers = #tpu.dot_dimension_numbers<[1], [0], [0], [1], [0, 0, 1, 1], [], []>} : vector<16x32xbf16>, vector<32x128xbf16>, vector<16x128xf32> -> vector<16x128xf32>
    %84 = vector.shape_cast %13 : vector<128xf32> to vector<1x128xf32>
    %85 = vector.broadcast %84 : vector<1x128xf32> to vector<16x128xf32>
    %86 = arith.addf %83, %85 : vector<16x128xf32>
    %cst_27 = arith.constant 5.000000e-01 : f32
    %87 = vector.broadcast %cst_27 : f32 to vector<16x128xf32>
    %88 = arith.mulf %87, %86 : vector<16x128xf32>
    %cst_28 = arith.constant 4.471500e-02 : f32
    %89 = vector.broadcast %cst_28 : f32 to vector<16x128xf32>
    %90 = arith.mulf %89, %86 : vector<16x128xf32>
    %91 = arith.mulf %90, %86 : vector<16x128xf32>
    %92 = arith.mulf %91, %86 : vector<16x128xf32>
    %93 = arith.addf %86, %92 : vector<16x128xf32>
    %cst_29 = arith.constant 0.797884583 : f32
    %94 = vector.broadcast %cst_29 : f32 to vector<16x128xf32>
    %95 = arith.mulf %94, %93 : vector<16x128xf32>
    %96 = math.tanh %95 : vector<16x128xf32>
    %cst_30 = arith.constant 1.000000e+00 : f32
    %97 = vector.broadcast %cst_30 : f32 to vector<16x128xf32>
    %98 = arith.addf %97, %96 : vector<16x128xf32>
    %99 = arith.mulf %88, %98 : vector<16x128xf32>
    %100 = arith.truncf %99 : vector<16x128xf32> to vector<16x128xbf16>
    %cst_31 = arith.constant dense<0.000000e+00> : vector<16x32xf32>
    %101 = tpu.matmul %100, %4, %cst_31 {dimension_numbers = #tpu.dot_dimension_numbers<[1], [0], [0], [1], [0, 0, 1, 1], [], []>} : vector<16x128xbf16>, vector<128x32xbf16>, vector<16x32xf32> -> vector<16x32xf32>
    %102 = vector.shape_cast %15 : vector<32xf32> to vector<1x32xf32>
    %103 = vector.broadcast %102 : vector<1x32xf32> to vector<16x32xf32>
    %104 = arith.addf %101, %103 : vector<16x32xf32>
    %105 = arith.addf %104, %81 : vector<16x32xf32>
    %cst_32 = arith.constant dense<0.000000e+00> : vector<16xf32>
    %106 = vector.multi_reduction <add>, %105, %cst_32 [1] : vector<16x32xf32> to vector<16xf32>
    %107 = vector.shape_cast %106 : vector<16xf32> to vector<16x1xf32>
    %cst_33 = arith.constant 3.200000e+01 : f32
    %108 = vector.broadcast %cst_33 : f32 to vector<16x1xf32>
    %109 = arith.divf %107, %108 : vector<16x1xf32>
    %110 = vector.broadcast %109 : vector<16x1xf32> to vector<16x32xf32>
    %111 = arith.subf %105, %110 : vector<16x32xf32>
    %112 = vector.broadcast %109 : vector<16x1xf32> to vector<16x32xf32>
    %113 = arith.subf %105, %112 : vector<16x32xf32>
    %114 = arith.mulf %111, %113 : vector<16x32xf32>
    %cst_34 = arith.constant dense<0.000000e+00> : vector<16xf32>
    %115 = vector.multi_reduction <add>, %114, %cst_34 [1] : vector<16x32xf32> to vector<16xf32>
    %116 = vector.shape_cast %115 : vector<16xf32> to vector<16x1xf32>
    %cst_35 = arith.constant 3.200000e+01 : f32
    %117 = vector.broadcast %cst_35 : f32 to vector<16x1xf32>
    %118 = arith.divf %116, %117 : vector<16x1xf32>
    %119 = vector.broadcast %109 : vector<16x1xf32> to vector<16x32xf32>
    %120 = arith.subf %105, %119 : vector<16x32xf32>
    %cst_36 = arith.constant 9.99999974E-6 : f32
    %121 = vector.broadcast %cst_36 : f32 to vector<16x1xf32>
    %122 = arith.addf %118, %121 : vector<16x1xf32>
    %123 = math.rsqrt %122 : vector<16x1xf32>
    %124 = vector.broadcast %123 : vector<16x1xf32> to vector<16x32xf32>
    %125 = arith.mulf %120, %124 : vector<16x32xf32>
    %126 = vector.shape_cast %17 : vector<32xf32> to vector<1x32xf32>
    %127 = vector.broadcast %126 : vector<1x32xf32> to vector<16x32xf32>
    %128 = arith.mulf %125, %127 : vector<16x32xf32>
    %129 = vector.shape_cast %19 : vector<32xf32> to vector<1x32xf32>
    %130 = vector.broadcast %129 : vector<1x32xf32> to vector<16x32xf32>
    %131 = arith.addf %128, %130 : vector<16x32xf32>
    %132 = arith.truncf %131 : vector<16x32xf32> to vector<16x32xbf16>
    %cst_37 = arith.constant dense<0.000000e+00> : vector<16x96xf32>
    %133 = tpu.matmul %132, %5, %cst_37 {dimension_numbers = #tpu.dot_dimension_numbers<[1], [0], [0], [1], [0, 0, 1, 1], [], []>} : vector<16x32xbf16>, vector<32x96xbf16>, vector<16x96xf32> -> vector<16x96xf32>
    %134 = vector.shape_cast %21 : vector<96xf32> to vector<1x96xf32>
    %135 = vector.broadcast %134 : vector<1x96xf32> to vector<16x96xf32>
    %136 = arith.addf %133, %135 : vector<16x96xf32>
    %cst_38 = arith.constant 5.000000e-01 : f32
    %137 = vector.broadcast %cst_38 : f32 to vector<16x96xf32>
    %138 = arith.mulf %137, %136 : vector<16x96xf32>
    %cst_39 = arith.constant 4.471500e-02 : f32
    %139 = vector.broadcast %cst_39 : f32 to vector<16x96xf32>
    %140 = arith.mulf %139, %136 : vector<16x96xf32>
    %141 = arith.mulf %140, %136 : vector<16x96xf32>
    %142 = arith.mulf %141, %136 : vector<16x96xf32>
    %143 = arith.addf %136, %142 : vector<16x96xf32>
    %cst_40 = arith.constant 0.797884583 : f32
    %144 = vector.broadcast %cst_40 : f32 to vector<16x96xf32>
    %145 = arith.mulf %144, %143 : vector<16x96xf32>
    %146 = math.tanh %145 : vector<16x96xf32>
    %cst_41 = arith.constant 1.000000e+00 : f32
    %147 = vector.broadcast %cst_41 : f32 to vector<16x96xf32>
    %148 = arith.addf %147, %146 : vector<16x96xf32>
    %149 = arith.mulf %138, %148 : vector<16x96xf32>
    %150 = arith.truncf %149 : vector<16x96xf32> to vector<16x96xbf16>
    %cst_42 = arith.constant dense<0.000000e+00> : vector<16x33xf32>
    %151 = tpu.matmul %150, %6, %cst_42 {dimension_numbers = #tpu.dot_dimension_numbers<[1], [0], [0], [1], [0, 0, 1, 1], [], []>} : vector<16x96xbf16>, vector<96x33xbf16>, vector<16x33xf32> -> vector<16x33xf32>
    %152 = vector.shape_cast %23 : vector<33xf32> to vector<1x33xf32>
    %153 = vector.broadcast %152 : vector<1x33xf32> to vector<16x33xf32>
    %154 = arith.addf %151, %153 : vector<16x33xf32>
    %155 = vector.extract_strided_slice %154 {offsets = [0, 0], sizes = [16, 32], strides = [1, 1]} : vector<16x33xf32> to vector<16x32xf32>
    %156 = vector.extract_strided_slice %154 {offsets = [0, 32], sizes = [16, 1], strides = [1, 1]} : vector<16x33xf32> to vector<16x1xf32>
    %cst_43 = arith.constant 0.000000e+00 : f32
    %157 = vector.broadcast %cst_43 : f32 to vector<16x1xf32>
    %158 = arith.subf %157, %156 : vector<16x1xf32>
    %159 = math.exp %158 : vector<16x1xf32>
    %cst_44 = arith.constant 1.000000e+00 : f32
    %160 = vector.broadcast %cst_44 : f32 to vector<16x1xf32>
    %161 = arith.addf %160, %159 : vector<16x1xf32>
    %162 = tpu.reciprocal %161 {approx = true} : vector<16x1xf32> -> vector<16x1xf32>
    %163 = vector.broadcast %162 : vector<16x1xf32> to vector<16x32xf32>
    %164 = arith.mulf %131, %163 : vector<16x32xf32>
    %cst_45 = arith.constant 1.000000e+00 : f32
    %165 = vector.broadcast %cst_45 : f32 to vector<16x1xf32>
    %166 = arith.subf %165, %162 : vector<16x1xf32>
    %167 = vector.broadcast %166 : vector<16x1xf32> to vector<16x32xf32>
    %168 = arith.mulf %155, %167 : vector<16x32xf32>
    %169 = arith.addf %164, %168 : vector<16x32xf32>
    %170 = tpu.concatenate %44, %73, %162, %38 in 1 : vector<16x32xf32>, vector<16x4xf32>, vector<16x1xf32>, vector<16x91xf32> -> vector<16x128xf32>
    %c0_46 = arith.constant 0 : index
    %c0_47 = arith.constant 0 : index
    %c0_48 = arith.constant 0 : index
    %171 = vector.load %arg3[%c0_46, %c0_47, %c0_48] : memref<3x16x128xf32, #tpu.memory_space<vmem>>, vector<1x16x128xf32>
    %172 = vector.shape_cast %171 : vector<1x16x128xf32> to vector<16x128xf32>
    %173 = vector.shape_cast %170 : vector<16x128xf32> to vector<1x16x128xf32>
    tpu.vector_store %arg3[%c0_46, %c0_47, %c0_48], %173 {strides = array<i32>} : memref<3x16x128xf32, #tpu.memory_space<vmem>>, vector<1x16x128xf32>,
    %174 = arith.truncf %169 : vector<16x32xf32> to vector<16x32xbf16>
    %cst_49 = arith.constant dense<0.000000e+00> : vector<16x260xf32>
    %175 = tpu.matmul %174, %34, %cst_49 {dimension_numbers = #tpu.dot_dimension_numbers<[1], [0], [0], [1], [0, 0, 1, 1], [], []>} : vector<16x32xbf16>, vector<32x260xbf16>, vector<16x260xf32> -> vector<16x260xf32>
    %176 = vector.broadcast %37 : vector<1x260xf32> to vector<16x260xf32>
    %177 = arith.addf %175, %176 : vector<16x260xf32>
    %178 = vector.extract_strided_slice %177 {offsets = [0, 0], sizes = [16, 256], strides = [1, 1]} : vector<16x260xf32> to vector<16x256xf32>
    %cst_50 = arith.constant 5.000000e-01 : f32
    %179 = vector.broadcast %cst_50 : f32 to vector<16x256xf32>
    %180 = arith.mulf %179, %178 : vector<16x256xf32>
    %cst_51 = arith.constant 4.471500e-02 : f32
    %181 = vector.broadcast %cst_51 : f32 to vector<16x256xf32>
    %182 = arith.mulf %181, %178 : vector<16x256xf32>
    %183 = arith.mulf %182, %178 : vector<16x256xf32>
    %184 = arith.mulf %183, %178 : vector<16x256xf32>
    %185 = arith.addf %178, %184 : vector<16x256xf32>
    %cst_52 = arith.constant 0.797884583 : f32
    %186 = vector.broadcast %cst_52 : f32 to vector<16x256xf32>
    %187 = arith.mulf %186, %185 : vector<16x256xf32>
    %188 = math.tanh %187 : vector<16x256xf32>
    %cst_53 = arith.constant 1.000000e+00 : f32
    %189 = vector.broadcast %cst_53 : f32 to vector<16x256xf32>
    %190 = arith.addf %189, %188 : vector<16x256xf32>
    %191 = arith.mulf %180, %190 : vector<16x256xf32>
    %192 = vector.extract_strided_slice %177 {offsets = [0, 256], sizes = [16, 4], strides = [1, 1]} : vector<16x260xf32> to vector<16x4xf32>
    %cst_54 = arith.constant dense<0xFF800000> : vector<16xf32>
    %193 = vector.multi_reduction <maximumf>, %192, %cst_54 [1] : vector<16x4xf32> to vector<16xf32>
    %194 = vector.shape_cast %193 : vector<16xf32> to vector<16x1xf32>
    %195 = vector.broadcast %194 : vector<16x1xf32> to vector<16x4xf32>
    %196 = arith.subf %192, %195 : vector<16x4xf32>
    %197 = math.exp %196 : vector<16x4xf32>
    %cst_55 = arith.constant dense<0.000000e+00> : vector<16xf32>
    %198 = vector.multi_reduction <add>, %197, %cst_55 [1] : vector<16x4xf32> to vector<16xf32>
    %199 = vector.shape_cast %198 : vector<16xf32> to vector<16x1xf32>
    %200 = tpu.reciprocal %199 {approx = true} : vector<16x1xf32> -> vector<16x1xf32>
    %201 = vector.broadcast %200 : vector<16x1xf32> to vector<16x4xf32>
    %202 = arith.mulf %197, %201 : vector<16x4xf32>
    %203 = arith.truncf %202 : vector<16x4xf32> to vector<16x4xbf16>
    %cst_56 = arith.constant dense<0.000000e+00> : vector<16x288xf32>
    %204 = tpu.matmul %203, %35, %cst_56 {dimension_numbers = #tpu.dot_dimension_numbers<[1], [0], [0], [1], [0, 0, 1, 1], [], []>} : vector<16x4xbf16>, vector<4x288xbf16>, vector<16x288xf32> -> vector<16x288xf32>
    %205 = vector.extract_strided_slice %204 {offsets = [0, 0], sizes = [16, 256], strides = [1, 1]} : vector<16x288xf32> to vector<16x256xf32>
    %206 = vector.extract_strided_slice %204 {offsets = [0, 256], sizes = [16, 32], strides = [1, 1]} : vector<16x288xf32> to vector<16x32xf32>
    %207 = arith.mulf %191, %205 : vector<16x256xf32>
    %208 = arith.truncf %207 : vector<16x256xf32> to vector<16x256xbf16>
    %cst_57 = arith.constant dense<0.000000e+00> : vector<16x32xf32>
    %209 = tpu.matmul %208, %2, %cst_57 {dimension_numbers = #tpu.dot_dimension_numbers<[1], [0], [0], [1], [0, 0, 1, 1], [], []>} : vector<16x256xbf16>, vector<256x32xbf16>, vector<16x32xf32> -> vector<16x32xf32>
    %210 = arith.addf %209, %206 : vector<16x32xf32>
    %211 = arith.truncf %210 : vector<16x32xf32> to vector<16x32xbf16>
    %cst_58 = arith.constant dense<0.000000e+00> : vector<16x128xf32>
    %212 = tpu.matmul %211, %3, %cst_58 {dimension_numbers = #tpu.dot_dimension_numbers<[1], [0], [0], [1], [0, 0, 1, 1], [], []>} : vector<16x32xbf16>, vector<32x128xbf16>, vector<16x128xf32> -> vector<16x128xf32>
    %213 = vector.shape_cast %13 : vector<128xf32> to vector<1x128xf32>
    %214 = vector.broadcast %213 : vector<1x128xf32> to vector<16x128xf32>
    %215 = arith.addf %212, %214 : vector<16x128xf32>
    %cst_59 = arith.constant 5.000000e-01 : f32
    %216 = vector.broadcast %cst_59 : f32 to vector<16x128xf32>
    %217 = arith.mulf %216, %215 : vector<16x128xf32>
    %cst_60 = arith.constant 4.471500e-02 : f32
    %218 = vector.broadcast %cst_60 : f32 to vector<16x128xf32>
    %219 = arith.mulf %218, %215 : vector<16x128xf32>
    %220 = arith.mulf %219, %215 : vector<16x128xf32>
    %221 = arith.mulf %220, %215 : vector<16x128xf32>
    %222 = arith.addf %215, %221 : vector<16x128xf32>
    %cst_61 = arith.constant 0.797884583 : f32
    %223 = vector.broadcast %cst_61 : f32 to vector<16x128xf32>
    %224 = arith.mulf %223, %222 : vector<16x128xf32>
    %225 = math.tanh %224 : vector<16x128xf32>
    %cst_62 = arith.constant 1.000000e+00 : f32
    %226 = vector.broadcast %cst_62 : f32 to vector<16x128xf32>
    %227 = arith.addf %226, %225 : vector<16x128xf32>
    %228 = arith.mulf %217, %227 : vector<16x128xf32>
    %229 = arith.truncf %228 : vector<16x128xf32> to vector<16x128xbf16>
    %cst_63 = arith.constant dense<0.000000e+00> : vector<16x32xf32>
    %230 = tpu.matmul %229, %4, %cst_63 {dimension_numbers = #tpu.dot_dimension_numbers<[1], [0], [0], [1], [0, 0, 1, 1], [], []>} : vector<16x128xbf16>, vector<128x32xbf16>, vector<16x32xf32> -> vector<16x32xf32>
    %231 = vector.shape_cast %15 : vector<32xf32> to vector<1x32xf32>
    %232 = vector.broadcast %231 : vector<1x32xf32> to vector<16x32xf32>
    %233 = arith.addf %230, %232 : vector<16x32xf32>
    %234 = arith.addf %233, %210 : vector<16x32xf32>
    %cst_64 = arith.constant dense<0.000000e+00> : vector<16xf32>
    %235 = vector.multi_reduction <add>, %234, %cst_64 [1] : vector<16x32xf32> to vector<16xf32>
    %236 = vector.shape_cast %235 : vector<16xf32> to vector<16x1xf32>
    %cst_65 = arith.constant 3.200000e+01 : f32
    %237 = vector.broadcast %cst_65 : f32 to vector<16x1xf32>
    %238 = arith.divf %236, %237 : vector<16x1xf32>
    %239 = vector.broadcast %238 : vector<16x1xf32> to vector<16x32xf32>
    %240 = arith.subf %234, %239 : vector<16x32xf32>
    %241 = vector.broadcast %238 : vector<16x1xf32> to vector<16x32xf32>
    %242 = arith.subf %234, %241 : vector<16x32xf32>
    %243 = arith.mulf %240, %242 : vector<16x32xf32>
    %cst_66 = arith.constant dense<0.000000e+00> : vector<16xf32>
    %244 = vector.multi_reduction <add>, %243, %cst_66 [1] : vector<16x32xf32> to vector<16xf32>
    %245 = vector.shape_cast %244 : vector<16xf32> to vector<16x1xf32>
    %cst_67 = arith.constant 3.200000e+01 : f32
    %246 = vector.broadcast %cst_67 : f32 to vector<16x1xf32>
    %247 = arith.divf %245, %246 : vector<16x1xf32>
    %248 = vector.broadcast %238 : vector<16x1xf32> to vector<16x32xf32>
    %249 = arith.subf %234, %248 : vector<16x32xf32>
    %cst_68 = arith.constant 9.99999974E-6 : f32
    %250 = vector.broadcast %cst_68 : f32 to vector<16x1xf32>
    %251 = arith.addf %247, %250 : vector<16x1xf32>
    %252 = math.rsqrt %251 : vector<16x1xf32>
    %253 = vector.broadcast %252 : vector<16x1xf32> to vector<16x32xf32>
    %254 = arith.mulf %249, %253 : vector<16x32xf32>
    %255 = vector.shape_cast %17 : vector<32xf32> to vector<1x32xf32>
    %256 = vector.broadcast %255 : vector<1x32xf32> to vector<16x32xf32>
    %257 = arith.mulf %254, %256 : vector<16x32xf32>
    %258 = vector.shape_cast %19 : vector<32xf32> to vector<1x32xf32>
    %259 = vector.broadcast %258 : vector<1x32xf32> to vector<16x32xf32>
    %260 = arith.addf %257, %259 : vector<16x32xf32>
    %261 = arith.truncf %260 : vector<16x32xf32> to vector<16x32xbf16>
    %cst_69 = arith.constant dense<0.000000e+00> : vector<16x96xf32>
    %262 = tpu.matmul %261, %5, %cst_69 {dimension_numbers = #tpu.dot_dimension_numbers<[1], [0], [0], [1], [0, 0, 1, 1], [], []>} : vector<16x32xbf16>, vector<32x96xbf16>, vector<16x96xf32> -> vector<16x96xf32>
    %263 = vector.shape_cast %21 : vector<96xf32> to vector<1x96xf32>
    %264 = vector.broadcast %263 : vector<1x96xf32> to vector<16x96xf32>
    %265 = arith.addf %262, %264 : vector<16x96xf32>
    %cst_70 = arith.constant 5.000000e-01 : f32
    %266 = vector.broadcast %cst_70 : f32 to vector<16x96xf32>
    %267 = arith.mulf %266, %265 : vector<16x96xf32>
    %cst_71 = arith.constant 4.471500e-02 : f32
    %268 = vector.broadcast %cst_71 : f32 to vector<16x96xf32>
    %269 = arith.mulf %268, %265 : vector<16x96xf32>
    %270 = arith.mulf %269, %265 : vector<16x96xf32>
    %271 = arith.mulf %270, %265 : vector<16x96xf32>
    %272 = arith.addf %265, %271 : vector<16x96xf32>
    %cst_72 = arith.constant 0.797884583 : f32
    %273 = vector.broadcast %cst_72 : f32 to vector<16x96xf32>
    %274 = arith.mulf %273, %272 : vector<16x96xf32>
    %275 = math.tanh %274 : vector<16x96xf32>
    %cst_73 = arith.constant 1.000000e+00 : f32
    %276 = vector.broadcast %cst_73 : f32 to vector<16x96xf32>
    %277 = arith.addf %276, %275 : vector<16x96xf32>
    %278 = arith.mulf %267, %277 : vector<16x96xf32>
    %279 = arith.truncf %278 : vector<16x96xf32> to vector<16x96xbf16>
    %cst_74 = arith.constant dense<0.000000e+00> : vector<16x33xf32>
    %280 = tpu.matmul %279, %6, %cst_74 {dimension_numbers = #tpu.dot_dimension_numbers<[1], [0], [0], [1], [0, 0, 1, 1], [], []>} : vector<16x96xbf16>, vector<96x33xbf16>, vector<16x33xf32> -> vector<16x33xf32>
    %281 = vector.shape_cast %23 : vector<33xf32> to vector<1x33xf32>
    %282 = vector.broadcast %281 : vector<1x33xf32> to vector<16x33xf32>
    %283 = arith.addf %280, %282 : vector<16x33xf32>
    %284 = vector.extract_strided_slice %283 {offsets = [0, 0], sizes = [16, 32], strides = [1, 1]} : vector<16x33xf32> to vector<16x32xf32>
    %285 = vector.extract_strided_slice %283 {offsets = [0, 32], sizes = [16, 1], strides = [1, 1]} : vector<16x33xf32> to vector<16x1xf32>
    %cst_75 = arith.constant 0.000000e+00 : f32
    %286 = vector.broadcast %cst_75 : f32 to vector<16x1xf32>
    %287 = arith.subf %286, %285 : vector<16x1xf32>
    %288 = math.exp %287 : vector<16x1xf32>
    %cst_76 = arith.constant 1.000000e+00 : f32
    %289 = vector.broadcast %cst_76 : f32 to vector<16x1xf32>
    %290 = arith.addf %289, %288 : vector<16x1xf32>
    %291 = tpu.reciprocal %290 {approx = true} : vector<16x1xf32> -> vector<16x1xf32>
    %292 = vector.broadcast %291 : vector<16x1xf32> to vector<16x32xf32>
    %293 = arith.mulf %260, %292 : vector<16x32xf32>
    %cst_77 = arith.constant 1.000000e+00 : f32
    %294 = vector.broadcast %cst_77 : f32 to vector<16x1xf32>
    %295 = arith.subf %294, %291 : vector<16x1xf32>
    %296 = vector.broadcast %295 : vector<16x1xf32> to vector<16x32xf32>
    %297 = arith.mulf %284, %296 : vector<16x32xf32>
    %298 = arith.addf %293, %297 : vector<16x32xf32>
    %299 = tpu.concatenate %169, %202, %291, %38 in 1 : vector<16x32xf32>, vector<16x4xf32>, vector<16x1xf32>, vector<16x91xf32> -> vector<16x128xf32>
    %c1 = arith.constant 1 : index
    %c0_78 = arith.constant 0 : index
    %c0_79 = arith.constant 0 : index
    %300 = vector.load %arg3[%c1, %c0_78, %c0_79] : memref<3x16x128xf32, #tpu.memory_space<vmem>>, vector<1x16x128xf32>
    %301 = vector.shape_cast %300 : vector<1x16x128xf32> to vector<16x128xf32>
    %302 = vector.shape_cast %299 : vector<16x128xf32> to vector<1x16x128xf32>
    tpu.vector_store %arg3[%c1, %c0_78, %c0_79], %302 {strides = array<i32>} : memref<3x16x128xf32, #tpu.memory_space<vmem>>, vector<1x16x128xf32>,
    %cst_80 = arith.constant dense<0.000000e+00> : vector<16xf32>
    %303 = vector.multi_reduction <add>, %298, %cst_80 [1] : vector<16x32xf32> to vector<16xf32>
    %304 = vector.shape_cast %303 : vector<16xf32> to vector<16x1xf32>
    %cst_81 = arith.constant 3.200000e+01 : f32
    %305 = vector.broadcast %cst_81 : f32 to vector<16x1xf32>
    %306 = arith.divf %304, %305 : vector<16x1xf32>
    %307 = vector.broadcast %306 : vector<16x1xf32> to vector<16x32xf32>
    %308 = arith.subf %298, %307 : vector<16x32xf32>
    %309 = vector.broadcast %306 : vector<16x1xf32> to vector<16x32xf32>
    %310 = arith.subf %298, %309 : vector<16x32xf32>
    %311 = arith.mulf %308, %310 : vector<16x32xf32>
    %cst_82 = arith.constant dense<0.000000e+00> : vector<16xf32>
    %312 = vector.multi_reduction <add>, %311, %cst_82 [1] : vector<16x32xf32> to vector<16xf32>
    %313 = vector.shape_cast %312 : vector<16xf32> to vector<16x1xf32>
    %cst_83 = arith.constant 3.200000e+01 : f32
    %314 = vector.broadcast %cst_83 : f32 to vector<16x1xf32>
    %315 = arith.divf %313, %314 : vector<16x1xf32>
    %316 = vector.broadcast %306 : vector<16x1xf32> to vector<16x32xf32>
    %317 = arith.subf %298, %316 : vector<16x32xf32>
    %cst_84 = arith.constant 9.99999974E-6 : f32
    %318 = vector.broadcast %cst_84 : f32 to vector<16x1xf32>
    %319 = arith.addf %315, %318 : vector<16x1xf32>
    %320 = math.rsqrt %319 : vector<16x1xf32>
    %321 = vector.broadcast %320 : vector<16x1xf32> to vector<16x32xf32>
    %322 = arith.mulf %317, %321 : vector<16x32xf32>
    %323 = vector.shape_cast %25 : vector<32xf32> to vector<1x32xf32>
    %324 = vector.broadcast %323 : vector<1x32xf32> to vector<16x32xf32>
    %325 = arith.mulf %322, %324 : vector<16x32xf32>
    %326 = vector.shape_cast %27 : vector<32xf32> to vector<1x32xf32>
    %327 = vector.broadcast %326 : vector<1x32xf32> to vector<16x32xf32>
    %328 = arith.addf %325, %327 : vector<16x32xf32>
    %329 = arith.truncf %328 : vector<16x32xf32> to vector<16x32xbf16>
    %cst_85 = arith.constant dense<0.000000e+00> : vector<16x32xf32>
    %330 = tpu.matmul %329, %7, %cst_85 {dimension_numbers = #tpu.dot_dimension_numbers<[1], [0], [0], [1], [0, 0, 1, 1], [], []>} : vector<16x32xbf16>, vector<32x32xbf16>, vector<16x32xf32> -> vector<16x32xf32>
    %331 = vector.shape_cast %29 : vector<32xf32> to vector<1x32xf32>
    %332 = vector.broadcast %331 : vector<1x32xf32> to vector<16x32xf32>
    %333 = arith.addf %330, %332 : vector<16x32xf32>
    %334 = arith.addf %333, %0 : vector<16x32xf32>
    %cst_86 = arith.constant dense<0.000000e+00> : vector<16xf32>
    %335 = vector.multi_reduction <add>, %334, %cst_86 [1] : vector<16x32xf32> to vector<16xf32>
    %336 = vector.shape_cast %335 : vector<16xf32> to vector<16x1xf32>
    %cst_87 = arith.constant 3.200000e+01 : f32
    %337 = vector.broadcast %cst_87 : f32 to vector<16x1xf32>
    %338 = arith.divf %336, %337 : vector<16x1xf32>
    %339 = vector.broadcast %338 : vector<16x1xf32> to vector<16x32xf32>
    %340 = arith.subf %334, %339 : vector<16x32xf32>
    %341 = vector.broadcast %338 : vector<16x1xf32> to vector<16x32xf32>
    %342 = arith.subf %334, %341 : vector<16x32xf32>
    %343 = arith.mulf %340, %342 : vector<16x32xf32>
    %cst_88 = arith.constant dense<0.000000e+00> : vector<16xf32>
    %344 = vector.multi_reduction <add>, %343, %cst_88 [1] : vector<16x32xf32> to vector<16xf32>
    %345 = vector.shape_cast %344 : vector<16xf32> to vector<16x1xf32>
    %cst_89 = arith.constant 3.200000e+01 : f32
    %346 = vector.broadcast %cst_89 : f32 to vector<16x1xf32>
    %347 = arith.divf %345, %346 : vector<16x1xf32>
    %348 = vector.broadcast %338 : vector<16x1xf32> to vector<16x32xf32>
    %349 = arith.subf %334, %348 : vector<16x32xf32>
    %cst_90 = arith.constant 9.99999974E-6 : f32
    %350 = vector.broadcast %cst_90 : f32 to vector<16x1xf32>
    %351 = arith.addf %347, %350 : vector<16x1xf32>
    %352 = math.rsqrt %351 : vector<16x1xf32>
    %353 = vector.broadcast %352 : vector<16x1xf32> to vector<16x32xf32>
    %354 = arith.mulf %349, %353 : vector<16x32xf32>
    %355 = vector.shape_cast %31 : vector<32xf32> to vector<1x32xf32>
    %356 = vector.broadcast %355 : vector<1x32xf32> to vector<16x32xf32>
    %357 = arith.mulf %354, %356 : vector<16x32xf32>
    %358 = vector.shape_cast %33 : vector<32xf32> to vector<1x32xf32>
    %359 = vector.broadcast %358 : vector<1x32xf32> to vector<16x32xf32>
    %360 = arith.addf %357, %359 : vector<16x32xf32>
    %361 = tpu.concatenate %360, %39 in 1 : vector<16x32xf32>, vector<16x96xf32> -> vector<16x128xf32>
    %c2 = arith.constant 2 : index
    %c0_91 = arith.constant 0 : index
    %c0_92 = arith.constant 0 : index
    %362 = vector.load %arg3[%c2, %c0_91, %c0_92] : memref<3x16x128xf32, #tpu.memory_space<vmem>>, vector<1x16x128xf32>
    %363 = vector.shape_cast %362 : vector<1x16x128xf32> to vector<16x128xf32>
    %364 = vector.shape_cast %361 : vector<16x128xf32> to vector<1x16x128xf32>
    tpu.vector_store %arg3[%c2, %c0_91, %c0_92], %364 {strides = array<i32>} : memref<3x16x128xf32, #tpu.memory_space<vmem>>, vector<1x16x128xf32>,
    return
  }
}

</mosaic_0001>

<bundles_post_ra>
// kernel: squeeze.14
= control target key start
LH: loop header
LB: loop body
LE: loop exit
PB: predicated region body
PF: predicated region fallthrough
CT: control target
= control target key end

     0   :  { %s77_s0 = inlined_call_operand.vmem [shape: f32[16], index: 0, kind: input, shape index: {}]   ;;  %s78_s1 = inlined_call_operand.hbm [shape: f32[2,8,1], index: 1, kind: output, shape index: {}]  }
   0x1   :  { %v6_v0 = vld [vmem:[%s77_s0] sm:$0x1] }
   0x2   :  { %2 = vsyncpa [#allocation1], 0  ;;  %7 = vst [vmem:[#allocation3] sm:$0x1] %v6_v0  ;;  %vm9_vm0 = vcmask 64512   ;;  %s59_s0 = smov 120  }
   0x3   :  { %s60_s8 = smov [#allocation0]  }
   0x4   :  { %s29_s9 = sshll.u32 %s60_s8, 4  ;;  %s30_s9 = int_to_ptr.vmem [resolvable:$true] %s29_s9 }
   0x5   :  { %s37_s10 = scalar_lea.vmem %s30_s9, 32  ;;  %p42_p1 = scmp.lt.s32.totalorder %s30_s9, %s30_s9 }
   0x6   :  { %p38_p0 = scmp.ne.s32.totalorder %s30_s9, %s37_s10  ;;  %p43_p2 = scmp.lt.s32.totalorder %s37_s10, %s37_s10 }
   0x8   :  { %p44_p3 = por %p43_p2, %p42_p1 }
   0x9   :  { %v11_v1 = vld [vmem:[#allocation3] sm:$0x1]  }
   0xa   :  { %v8_v2 = vld [vmem:[#allocation3] sm:$0x1]   ;;  %12 = vrot.lane.b32.xlu0 %v11_v1, %s59_s0  ;;  %p45_p4 = pnand %p44_p3, %p38_p0 }
   0xb   :  { %10 = vst.msk [vmem:[#allocation2] sm:$0x1] %vm9_vm0, %v8_v2  }
  0x7c   :  { %v13_v3 = vpop.permute.xlu0 %12  }
  0x7d   :  { %16 = vst.msk [vmem:[#allocation2 + $0x1] sm:$0x1] %vm9_vm0, %v13_v3  }
  0x84   :  { %v21_v4 = vld [vmem:[#allocation2] sm:$0x3] }
  0x85   :  { %24 = vst [vmem:[#allocation0] sm:$0x3] %v21_v4 }
  0x86   :  { %48 = shalt.err (!%p45_p4)
}
  0x87   :  { %32 = dma.vmem_to_hbm [thread:$0]  %s30_s9, 32, %s78_s1, [#allocation1]  }
  0x88   :  { %57 = dma.done.wait [#allocation1], 32  }
  0x89   :  { %58 = vsyncadd [#allocation1], 4294967264 }
  0x8a   :  { %34 = vsyncpa [#allocation1], 1 }

// kernel: knowledge_reasoning_forward.1
= control target key start
LH: loop header
LB: loop body
LE: loop exit
PB: predicated region body
PF: predicated region fallthrough
CT: control target
= control target key end

     0   :  { %8 = vsyncpa [#allocation3], 0  ;;  %s2893_s0 = inlined_call_operand.vmem [shape: f32[16,32], index: 0, kind: input, shape index: {}]   ;;  %s2894_s1 = inlined_call_operand.hbm [shape: bf16[624,128], index: 1, kind: input, shape index: {}]   ;;  %s2895_s2 = inlined_call_operand.hbm [shape: bf16[48,288], index: 2, kind: input, shape index: {}]   ;;  %s2896_s3 = inlined_call_operand.vmem [shape: f32[3,16,128], index: 3, kind: output, shape index: {}]  }
   0x1   :  { %9 = vsyncpa [#allocation5], 0  ;;  %s2335_s12 = smov [#allocation2]  }
   0x2   :  { %s17_s13 = sshll.u32 %s2335_s12, 4  ;;  %s18_s13 = int_to_ptr.vmem [resolvable:$true] %s17_s13 }
   0x3   :  { %s2299_s14 = scalar_lea.vmem %s18_s13, 4992  ;;  %p2304_p1 = scmp.lt.s32.totalorder %s18_s13, %s18_s13 }
   0x4   :  { %p2300_p0 = scmp.ne.s32.totalorder %s18_s13, %s2299_s14  ;;  %p2305_p2 = scmp.lt.s32.totalorder %s2299_s14, %s2299_s14 }
   0x6   :  { %p2306_p3 = por %p2305_p2, %p2304_p1 }
   0x8   :  { %p2307_p4 = pnand %p2306_p3, %p2300_p0 }
   0xa   :  { %2310 = shalt.err (!%p2307_p4)
}
   0xb   :  { %s2336_s15 = smov 64   ;;  %s2337_s16 = smov 4  }
   0xc   :  { %23 = dma.hbm_to_vmem [thread:$0]  %s2894_s1, 4992, %s18_s13, [#allocation3], %s2336_s15, %s2336_s15, %s2337_s16  }
   0xd   :  { %s2338_s19 = smov [#allocation4]  }
   0xe   :  { %s29_s20 = sshll.u32 %s2338_s19, 4  ;;  %s30_s20 = int_to_ptr.vmem [resolvable:$true] %s29_s20 }
   0xf   :  { %s2319_s21 = scalar_lea.vmem %s30_s20, 1152  ;;  %p2324_p6 = scmp.lt.s32.totalorder %s30_s20, %s30_s20 }
  0x10   :  { %p2320_p5 = scmp.ne.s32.totalorder %s30_s20, %s2319_s21  ;;  %p2325_p7 = scmp.lt.s32.totalorder %s2319_s21, %s2319_s21 }
  0x12   :  { %p2326_p8 = por %p2325_p7, %p2324_p6 }
  0x14   :  { %p2327_p9 = pnand %p2326_p8, %p2320_p5 }
  0x16   :  { %2330 = shalt.err (!%p2327_p9)
}
  0x17   :  { %s2339_s22 = smov 192   ;;  %s2340_s23 = smov 12  }
  0x18   :  { %35 = dma.hbm_to_vmem [thread:$0]  %s2895_s2, 1152, %s30_s20, [#allocation5], %s2339_s22, %s2339_s22, %s2340_s23  }
  0x19   :  { %2331 = dma.done.wait [#allocation3], 4992  }
  0x1a   :  { %2332 = vsyncadd [#allocation3], 4294962304 }
  0x1b   :  { %2333 = dma.done.wait [#allocation5], 1152  }
  0x1c   :  { %2334 = vsyncadd [#allocation5], 4294966144  ;;  %v2900_v0 = vmov 0.0   ;;  %vm2342_vm0 = vmmov 0   ;;  %v2159_v1 = vld [vmem:[#allocation2 + $0x8] sm:$0xff]   ;;  %v2160_v2 = vld [vmem:[#allocation2] sm:$0xff]   ;;  %v141_v13 = vlaneseq }
  0x1d   :  { %1998 = vmatprep.subr.bf16.mxu1 %v2900_v0  ;;  %2002 = vmatprep.mubr.msk.bf16.mxu1 %vm2342_vm0, %v2900_v0  ;;  %v43_v3 = vld [vmem:[%s2893_s0] sm:$0xff]  ;;  %v44_v4 = vld [vmem:[%s2893_s0 + $0x8] sm:$0xff]  ;;  %vm157_vm1 = vcmask 261120   ;;  %v2389_v7 = vld [vmem:[#allocation4 + $0x18] ss:$12 sps:$4 sm:$0xff]   ;;  %v2898_v12 = vmov 0  }
  0x1e   :  { %2006 = vmatprep.subr.bf16.mxu0 %v2900_v0  ;;  %2010 = vmatprep.mubr.msk.bf16.mxu0 %vm2342_vm0, %v2900_v0  ;;  %v140_v5 = vpack.c.bf16 %v44_v4, %v43_v3  ;;  %v2387_v6 = vld [vmem:[#allocation4 + $0x1c] ss:$12 sps:$4 sm:$0xff]   ;;  %v2391_v8 = vld [vmem:[#allocation4 + $0x20] ss:$12 sps:$4 sm:$0xff]   ;;  %v2396_v9 = vld [vmem:[#allocation4 + $0x4] ss:$12 sps:$4 sm:$0xff]  }
  0x1f   :  { %1999 = vmatpush3.bf16.msra.mxu1 %v2159_v1  ;;  %2007 = vmatpush3.bf16.msra.mxu0 %v2391_v8  ;;  %v2399_v10 = vld [vmem:[#allocation4] ss:$12 sps:$4 sm:$0xff]   ;;  %v2401_v11 = vld [vmem:[#allocation4 + $0x8] ss:$12 sps:$4 sm:$0xff]   ;;  %v2408_v14 = vshrl.u32 %v141_v13, 7  ;;  %v1893_v15 = vld [vmem:[#allocation2 + $0x130] sm:$0xff]  }
  0x20   :  { %2000 = vmatprep.subr.bf16.mxu1 %v2900_v0  ;;  %2008 = vmatprep.subr.bf16.mxu0 %v2900_v0  ;;  %v2410_v16 = vunpack.c.l.bf16 %v1893_v15  ;;  %v136_v26 = vld [vmem:[#allocation4 + $0x38] sm:$0x4]  ;;  %vm370_vm2 = vcmask 31744   ;;  %v133_v48 = vld [vmem:[#allocation4 + $0x30] sm:$0x33]  ;;  %vm405_vm3 = vcmask 1041408  }
  0x21   :  { %v2897_v17 = vsub.s32 0, %v2408_v14  ;;  %v2428_v27 = vsub.s32 4, %v2408_v14  ;;  %v139_v28 = vunpack.c.l.bf16 %v136_v26  ;;  %v2171_v49 = vld [vmem:[#allocation4 + $0x38] ss:$0 sps:$4 sm:$0x33]   ;;  %v2439_v50 = vcombine.high %v133_v48, %v133_v48  ;;  %v2452_v54 = vld [vmem:[#allocation2 + $0x88] sm:$0xff]  }
  0x22   :  { %v1831_v51 = vcombine.low %v133_v48, %v133_v48  ;;  %v2442_v52 = vsel %vm405_vm3, %v2171_v49, 0  ;;  %v2459_v61 = vld [vmem:[#allocation2 + $0x48] sm:$0xff]   ;;  %v2463_v63 = vld [vmem:[#allocation2 + $0x80] sm:$0xff]   ;;  %v2476_v3 = vld [vmem:[#allocation2 + $0x38] sm:$0xff]   ;;  %vm976_vm4 = vcmask 785408   ;;  %s2345_s5 = smov 32  }
  0x23   :  { %2001 = vmatpush3.bf16.msra.mxu1 %v2160_v2  ;;  %2009 = vmatpush3.bf16.msra.mxu0 %v2401_v11  ;;  %v144_v19 = vrot.slane %v2410_v16, %v2897_v17  ;;  %v2431_v29 = vrot.slane %v139_v28, %v2428_v27  ;;  %v2468_v1 = vld [vmem:[#allocation2 + $0x40] sm:$0xff]   ;;  %v2473_v2 = vld [vmem:[#allocation2 + $0x78] sm:$0xff]   ;;  %v2479_v4 = vld [vmem:[#allocation2 + $0x70] sm:$0xff]   ;;  %vm1075_vm5 = vcmask 293888   ;;  %vm1078_vm6 = vcmask 302080  }
  0x24   :  { %262 = vmatprep.subr.bf16.mxu1 %v2387_v6  ;;  %2014 = vmatprep.subr.bf16.mxu0 %v2900_v0  ;;  %v2447_v53 = vsel %vm405_vm3, %v1831_v51, 0  ;;  %v2485_v13 = vld [vmem:[#allocation2 + $0x68] sm:$0xff]  }
  0x25   :  { %v2488_v15 = vld [vmem:[#allocation2 + $0x28] sm:$0xff]  }
  0x26   :  { %2003 = vmatmul.mubr.msk.bf16.vlgmr.msra.gmra.mxu1 %vm157_vm1, %v140_v5  ;;  %v2482_v5 = vld [vmem:[#allocation2 + $0x30] sm:$0xff]   ;;  %v135_v28 = vld [vmem:[#allocation4 + $0x30] sm:$0x44] }
  0x27   :  { %263 = vmatpush1.bf16.msra.mxu1 %v2389_v7  ;;  %282 = vmatprep.mubr.bf16.mxu1 %v2898_v12 }
  0x28   :  { %264 = vmatprep.subr.bf16.mxu1 %v2396_v9 }
  0x2b   :  { %265 = vmatpush1.bf16.msra.mxu1 %v2399_v10 }
  0x2c   :  { %1834 = vmatprep.subr.msk.bf16.mxu1 %vm405_vm3, %v2439_v50 }
  0xe6   :  { %v195_v18 = vpop.f32.mrf.mxu1 }
  0xe7   :  { %v2416_v22 = vadd.f32 %v195_v18, %v144_v19  ;;  %v2492_v18 = vld [vmem:[#allocation2 + $0x60] sm:$0xff]  }
  0xe8   :  { %v2004_v20 = vpop.f32.mrf.mxu1 }
  0xe9   :  { %2922 = vst [vmem:[#allocation8_spill] sm:$0xff] %v2416_v22  ;;  %v2498_v20 = vld [vmem:[#allocation2 + $0x58] sm:$0xff]  }
  0xea   :  { %v198_v21 = vpop.f32.mrf.mxu1 }
  0xeb   :  { %v2418_v23 = vadd.f32 %v198_v21, %v144_v19  ;;  %v2494_v19 = vld [vmem:[#allocation2 + $0x20] sm:$0xff]   ;;  %v2500_v21 = vld [vmem:[#allocation2 + $0x18] sm:$0xff]  }
  0xec   :  { %v2005_v24 = vpop.f32.mrf.mxu1 }
  0xed   :  { %2923 = vst [vmem:[#allocation9_spill] sm:$0xff] %v2418_v23  ;;  %v202_v25 = vpack.c.bf16 %v2418_v23, %v2416_v22  ;;  %v2504_v24 = vld [vmem:[#allocation2 + $0x50] sm:$0xff]  }
  0xef   :  { %1829 = vmatmul.mubr.msk.bf16.vlgmr.msra.gmra.mxu1 %vm157_vm1, %v202_v25  ;;  %2011 = vmatmul.mubr.msk.bf16.vlgmr.msra.gmra.mxu0 %vm157_vm1, %v202_v25  ;;  %v2506_v25 = vld [vmem:[#allocation2 + $0x10] sm:$0xff]  }
  0xf0   :  { %447 = vmatprep.mubr.bf16.mxu1 %v2898_v12  ;;  %2016 = vmatprep.mubr.msk.bf16.mxu0 %vm2342_vm0, %v2900_v0 }
  0xf1   :  { %2015 = vmatpush3.bf16.msra.mxu0 %v2442_v52  ;;  %430 = vmatpush1.bf16.msra.mxu1 %v2447_v53 }
  0xf2   :  { %2020 = vmatprep.subr.bf16.mxu0 %v2900_v0  ;;  %1902 = vmatprep.subr.bf16.mxu1 %v2452_v54 }
 0x1af   :  { %v327_v30 = vpop.f32.mrf.mxu0  ;;  %v284_v26 = vpop.f32.mrf.mxu1 }
 0x1b0   :  { %v328_v31 = vadd.f32 %v327_v30, %v2431_v29 }
 0x1b1   :  { %v2012_v32 = vpop.f32.mrf.mxu0  ;;  %v286_v30 = vpop.f32.mrf.mxu1 }
 0x1b2   :  { %v371_v33 = vsel %vm370_vm2, %v328_v31, -inf  ;;  %v137_v32 = vunpack.c.l.bf16 %v135_v28 }
 0x1b3   :  { %372 = vmax.xlane.f32.xlu0 %v371_v33  ;;  %v330_v34 = vpop.f32.mrf.mxu0  ;;  %v288_v33 = vpop.f32.mrf.mxu1 }
 0x1b4   :  { %v331_v35 = vadd.f32 %v330_v34, %v2431_v29 }
 0x1b5   :  { %v2013_v36 = vpop.f32.mrf.mxu0 }
 0x1b6   :  { %v374_v37 = vsel %vm370_vm2, %v331_v35, -inf  ;;  %v290_v36 = vpop.f32.mrf.mxu1 }
 0x1b7   :  { %375 = vmax.xlane.f32.xlu0 %v374_v37 }
 0x23c   :  { %v373_v38 = vpop.xlane.xlu0 %372 }
 0x23d   :  { %v377_v39 = vsub.f32 %v328_v31, %v373_v38  ;;  %v138_v31 = vunpack.c.h.bf16 %v135_v28 }
 0x23f   :  { %v379_v40 = vmul.f32 1.442695, %v377_v39  ;;  %v2512_v34 = vrot.slane %v138_v31, %v2428_v27 }
 0x240   :  { %v376_v41 = vpop.xlane.xlu0 %375 }
 0x241   :  { %2208 = vpow2.f32 %v379_v40  ;;  %v378_v42 = vsub.f32 %v331_v35, %v376_v41  ;;  %v2515_v35 = vrot.slane %v137_v32, %v2428_v27  ;;  %v287_v37 = vadd.f32 %v286_v30, %v2512_v34 }
 0x242   :  { %v291_v39 = vadd.f32 %v290_v36, %v2512_v34 }
 0x243   :  { %v381_v43 = vmul.f32 1.442695, %v378_v42  ;;  %v289_v38 = vadd.f32 %v288_v33, %v2515_v35  ;;  %v285_v40 = vadd.f32 %v284_v26, %v2515_v35  ;;  %v339_v41 = vmul.f32 0.044715, %v287_v37 }
 0x245   :  { %2210 = vpow2.f32 %v381_v43  ;;  %v340_v42 = vmul.f32 0.044715, %v289_v38  ;;  %v341_v43 = vmul.f32 0.044715, %v291_v39 }
 0x24e   :  { %v2209_v44 = vpop.eup %2208 }
 0x24f   :  { %v383_v45 = vsel %vm370_vm2, %v2209_v44, 0.0 }
 0x250   :  { %384 = vadd.xlane.f32.xlu1 %v383_v45  ;;  %v343_v45 = vmul.f32 %v339_v41, %v287_v37 }
 0x252   :  { %v2211_v46 = vpop.eup %2210  ;;  %v347_v49 = vmul.f32 %v343_v45, %v287_v37 }
 0x253   :  { %v386_v47 = vsel %vm370_vm2, %v2211_v46, 0.0 }
 0x254   :  { %387 = vadd.xlane.f32.xlu1 %v386_v47  ;;  %v345_v47 = vmul.f32 %v341_v43, %v291_v39 }
 0x2d9   :  { %v385_v55 = vpop.xlane.xlu1 %384 }
 0x2da   :  { %2212 = vrcp.f32 %v385_v55  ;;  %v349_v55 = vmul.f32 %v345_v47, %v291_v39 }
 0x2dd   :  { %v388_v56 = vpop.xlane.xlu1 %387 }
 0x2de   :  { %2214 = vrcp.f32 %v388_v56 }
 0x2e7   :  { %v2213_v57 = vpop.eup %2212 }
 0x2e8   :  { %v2455_v59 = vmul.f32 %v2213_v57, %v2209_v44  ;;  %v338_v44 = vmul.f32 0.044715, %v285_v40  ;;  %v351_v57 = vadd.f32 %v347_v49, %v287_v37 }
 0x2ea   :  { %2924 = vst [vmem:[#allocation10_spill] sm:$0xff] %v2455_v59  ;;  %v342_v48 = vmul.f32 %v338_v44, %v285_v40  ;;  %v355_v30 = vmul.f32 0.7978846, %v351_v57  ;;  %v337_v57 = vmul.f32 0.5, %v291_v39 }
 0x2eb   :  { %v2215_v58 = vpop.eup %2214 }
 0x2ec   :  { %v2457_v60 = vmul.f32 %v2215_v58, %v2211_v46  ;;  %v344_v46 = vmul.f32 %v340_v42, %v289_v38  ;;  %v346_v56 = vmul.f32 %v342_v48, %v285_v40  ;;  %2216 = vtanh.f32 %v355_v30 }
 0x2ee   :  { %2925 = vst [vmem:[#allocation11_spill] sm:$0xff] %v2457_v60  ;;  %v393_v62 = vpack.c.bf16 %v2457_v60, %v2455_v59  ;;  %v348_v51 = vmul.f32 %v344_v46, %v289_v38  ;;  %v350_v28 = vadd.f32 %v346_v56, %v285_v40  ;;  %v335_v56 = vmul.f32 0.5, %v287_v37  ;;  %v2523_v37 = vld [vmem:[#allocation2 + $0x98] sm:$0xff]  }
 0x2f0   :  { %1835 = vmatmul.mubr.msk.bf16.vlgmr.msra.gmra.mxu1 %vm370_vm2, %v393_v62  ;;  %2017 = vmatmul.mubr.msk.bf16.vlgmr.msra.gmra.mxu0 %vm370_vm2, %v393_v62  ;;  %v352_v58 = vadd.f32 %v348_v51, %v289_v38  ;;  %v353_v62 = vadd.f32 %v349_v55, %v291_v39  ;;  %v354_v26 = vmul.f32 0.7978846, %v350_v28  ;;  %v336_v55 = vmul.f32 0.5, %v289_v38  ;;  %v2527_v39 = vld [vmem:[#allocation2 + $0x90] sm:$0xff]  }
 0x2f1   :  { %1903 = vmatpush3.bf16.msra.mxu1 %v2459_v61  ;;  %2024 = vmatprep.mubr.msk.bf16.mxu0 %vm2342_vm0, %v2900_v0  ;;  %v2926_v38 = vmov 0.0  }
 0x2f2   :  { %1904 = vmatprep.subr.bf16.mxu1 %v2463_v63  ;;  %v356_v31 = vmul.f32 0.7978846, %v352_v58  ;;  %v357_v32 = vmul.f32 0.7978846, %v353_v62  ;;  %v334_v58 = vmul.f32 0.5, %v285_v40  ;;  %2021 = vmatpush3.bf16.msra.mxu0 %v2523_v37 }
 0x2f3   :  { %2022 = vmatprep.subr.bf16.mxu0 %v2926_v38 }
 0x2f4   :  { %2218 = vtanh.f32 %v356_v31 }
 0x2f5   :  { %1905 = vmatpush3.bf16.msra.mxu1 %v2468_v1  ;;  %2220 = vtanh.f32 %v357_v32 }
 0x2f6   :  { %1906 = vmatprep.subr.bf16.mxu1 %v2473_v2  ;;  %2222 = vtanh.f32 %v354_v26  ;;  %2023 = vmatpush3.bf16.msra.mxu0 %v2527_v39 }
 0x2f7   :  { %2028 = vmatprep.subr.bf16.mxu0 %v2926_v38 }
 0x2f9   :  { %1907 = vmatpush3.bf16.msra.mxu1 %v2476_v3  ;;  %v2217_v33 = vpop.eup %2216 }
 0x2fa   :  { %1908 = vmatprep.subr.bf16.mxu1 %v2479_v4  ;;  %v363_v46 = vadd.f32 1.0, %v2217_v33 }
 0x2fc   :  { %v367_v31 = vmul.f32 %v363_v46, %v335_v56  ;;  %v2559_v56 = vld [vmem:[#allocation2 + $0xb0] sm:$0xff]  }
 0x2fd   :  { %1909 = vmatpush3.bf16.msra.mxu1 %v2482_v5 }
 0x2fe   :  { %1910 = vmatprep.subr.bf16.mxu1 %v2485_v13 }
 0x301   :  { %1911 = vmatpush3.bf16.msra.mxu1 %v2488_v15  ;;  %v2219_v36 = vpop.eup %2218 }
 0x302   :  { %1912 = vmatprep.subr.bf16.mxu1 %v2492_v18  ;;  %v2221_v41 = vpop.eup %2220  ;;  %v364_v45 = vadd.f32 1.0, %v2219_v36 }
 0x303   :  { %v2223_v42 = vpop.eup %2222  ;;  %v365_v47 = vadd.f32 1.0, %v2221_v41 }
 0x304   :  { %v362_v48 = vadd.f32 1.0, %v2223_v42  ;;  %v368_v62 = vmul.f32 %v364_v45, %v336_v55  ;;  %v2555_v55 = vld [vmem:[#allocation2 + $0xb8] sm:$0xff]  }
 0x305   :  { %1913 = vmatpush3.bf16.msra.mxu1 %v2494_v19  ;;  %v369_v32 = vmul.f32 %v365_v47, %v337_v57  ;;  %v2563_v57 = vld [vmem:[#allocation2 + $0xa8] sm:$0xff]  }
 0x306   :  { %1914 = vmatprep.subr.bf16.mxu1 %v2498_v20  ;;  %v366_v26 = vmul.f32 %v362_v48, %v334_v58  ;;  %v2540_v48 = vld [vmem:[#allocation2 + $0xd8] sm:$0xff]   ;;  %v2567_v58 = vld [vmem:[#allocation2 + $0xa0] sm:$0xff]  }
 0x307   :  { %2927 = vst [vmem:[#allocation12_spill] sm:$0xff] %v2567_v58 }
 0x309   :  { %1915 = vmatpush3.bf16.msra.mxu1 %v2500_v21 }
 0x30a   :  { %1916 = vmatprep.subr.bf16.mxu1 %v2504_v24 }
 0x30d   :  { %1917 = vmatpush3.bf16.msra.mxu1 %v2506_v25 }
 0x30e   :  { %2048 = vmatprep.subr.bf16.mxu1 %v2900_v0 }
 0x3b0   :  { %v449_v43 = vpop.f32.mrf.mxu1  ;;  %v492_v44 = vpop.f32.mrf.mxu0 }
 0x3b1   :  { %v499_v33 = vmul.f32 %v449_v43, %v366_v26 }
 0x3b2   :  { %v451_v49 = vpop.f32.mrf.mxu1  ;;  %v2018_v51 = vpop.f32.mrf.mxu0 }
 0x3b3   :  { %v500_v23 = vmul.f32 %v451_v49, %v367_v31  ;;  %v2544_v49 = vld [vmem:[#allocation2 + $0xd0] sm:$0xff]   ;;  %v2552_v51 = vld [vmem:[#allocation2 + $0xc0] sm:$0xff]  }
 0x3b4   :  { %v453_v28 = vpop.f32.mrf.mxu1  ;;  %v495_v30 = vpop.f32.mrf.mxu0 }
 0x3b5   :  { %v501_v17 = vmul.f32 %v453_v28, %v368_v62  ;;  %v2903_v62 = vsub.s32 1, %v2408_v14 }
 0x3b6   :  { %v455_v12 = vpop.f32.mrf.mxu1  ;;  %v2019_v0 = vpop.f32.mrf.mxu0 }
 0x3b7   :  { %v502_v36 = vmul.f32 %v455_v12, %v369_v32  ;;  %v503_v42 = vpack.c.bf16 %v501_v17, %v499_v33  ;;  %v2576_v28 = vrot.slane %v2410_v16, %v2903_v62 }
 0x3b9   :  { %v504_v41 = vpack.c.bf16 %v502_v36, %v500_v23 }
 0x3bb   :  { %633 = vmatprep.mubr.bf16.mxu1 %v504_v41 }
 0x3bc   :  { %634 = vmatmul.mubr.bf16.vlgmr.msra.gmra.mxu1 %v503_v42 }
 0x3bd   :  { %2052 = vmatprep.mubr.msk.bf16.mxu1 %vm2342_vm0, %v2926_v38 }
 0x47c   :  { %v1918_v0 = vpop.f32.mrf.mxu1 }
 0x47e   :  { %v1919_v12 = vpop.f32.mrf.mxu1 }
 0x47f   :  { %v1920_v23 = vadd.f32 %v1919_v12, %v1918_v0 }
 0x480   :  { %v1921_v17 = vpop.f32.mrf.mxu1 }
 0x481   :  { %v2531_v45 = vadd.f32 %v1920_v23, %v492_v44  ;;  %v2548_v44 = vld [vmem:[#allocation2 + $0xc8] sm:$0xff]  }
 0x482   :  { %v1922_v40 = vpop.f32.mrf.mxu1 }
 0x483   :  { %v1923_v43 = vadd.f32 %v1922_v40, %v1921_v17 }
 0x485   :  { %v2533_v46 = vadd.f32 %v1923_v43, %v495_v30 }
 0x487   :  { %v642_v47 = vpack.c.bf16 %v2533_v46, %v2531_v45 }
 0x489   :  { %2025 = vmatmul.mubr.msk.bf16.vlgmr.msra.gmra.mxu0 %vm157_vm1, %v642_v47 }
 0x48a   :  { %2044 = vmatprep.mubr.msk.bf16.mxu0 %vm2342_vm0, %v2926_v38  ;;  %2029 = vmatpush3.bf16.msra.mxu0 %v2540_v48 }
 0x48b   :  { %2030 = vmatprep.subr.bf16.mxu0 %v2926_v38 }
 0x48e   :  { %2031 = vmatpush3.bf16.msra.mxu0 %v2544_v49 }
 0x48f   :  { %2032 = vmatprep.subr.bf16.mxu0 %v2926_v38 }
 0x492   :  { %2033 = vmatpush3.bf16.msra.mxu0 %v2548_v44 }
 0x493   :  { %2034 = vmatprep.subr.bf16.mxu0 %v2926_v38 }
 0x496   :  { %2035 = vmatpush3.bf16.msra.mxu0 %v2552_v51 }
 0x497   :  { %2036 = vmatprep.subr.bf16.mxu0 %v2926_v38 }
 0x49a   :  { %2037 = vmatpush3.bf16.msra.mxu0 %v2555_v55 }
 0x49b   :  { %2038 = vmatprep.subr.bf16.mxu0 %v2926_v38 }
 0x49e   :  { %2039 = vmatpush3.bf16.msra.mxu0 %v2559_v56 }
 0x49f   :  { %2040 = vmatprep.subr.bf16.mxu0 %v2926_v38 }
 0x4a2   :  { %2041 = vmatpush3.bf16.msra.mxu0 %v2563_v57 }
 0x4a3   :  { %2042 = vmatprep.subr.bf16.mxu0 %v2926_v38 }
 0x4a6   :  { %2043 = vmatpush3.bf16.msra.mxu0 %v2567_v58 }
 0x4a7   :  { %1099 = vmatprep.subr.bf16.mxu0 %v2387_v6 }
 0x549   :  { %v696_v30 = vpop.f32.mrf.mxu0 }
 0x54a   :  { %v697_v31 = vadd.f32 %v696_v30, %v2576_v28 }
 0x54b   :  { %v2026_v32 = vpop.f32.mrf.mxu0 }
 0x54c   :  { %v705_v26 = vmul.f32 0.044715, %v697_v31  ;;  %v703_v32 = vmul.f32 0.5, %v697_v31 }
 0x54d   :  { %v699_v36 = vpop.f32.mrf.mxu0 }
 0x54e   :  { %v707_v33 = vmul.f32 %v705_v26, %v697_v31  ;;  %v700_v41 = vadd.f32 %v699_v36, %v2576_v28 }
 0x54f   :  { %v2027_v42 = vpop.f32.mrf.mxu0 }
 0x550   :  { %v709_v0 = vmul.f32 %v707_v33, %v697_v31  ;;  %v706_v12 = vmul.f32 0.044715, %v700_v41  ;;  %v704_v59 = vmul.f32 0.5, %v700_v41  ;;  %v2928_v33 = vmov 0  }
 0x552   :  { %v711_v6 = vadd.f32 %v709_v0, %v697_v31  ;;  %v708_v17 = vmul.f32 %v706_v12, %v700_v41 }
 0x554   :  { %v713_v23 = vmul.f32 0.7978846, %v711_v6  ;;  %v710_v40 = vmul.f32 %v708_v17, %v700_v41 }
 0x556   :  { %2224 = vtanh.f32 %v713_v23  ;;  %v712_v43 = vadd.f32 %v710_v40, %v700_v41 }
 0x558   :  { %v714_v47 = vmul.f32 0.7978846, %v712_v43 }
 0x55a   :  { %2226 = vtanh.f32 %v714_v47 }
 0x563   :  { %v2225_v62 = vpop.eup %2224 }
 0x564   :  { %v717_v22 = vadd.f32 1.0, %v2225_v62  ;;  %v2909_v62 = vsub.s32 2, %v2408_v14 }
 0x566   :  { %v719_v26 = vmul.f32 %v717_v22, %v703_v32  ;;  %v2589_v31 = vrot.slane %v2410_v16, %v2909_v62 }
 0x567   :  { %v2227_v30 = vpop.eup %2226 }
 0x568   :  { %v718_v60 = vadd.f32 1.0, %v2227_v30  ;;  %2929 = vst [vmem:[#allocation13_spill] sm:$0xff] %v2589_v31 }
 0x56a   :  { %v720_v58 = vmul.f32 %v718_v60, %v704_v59 }
 0x56c   :  { %v721_v36 = vpack.c.bf16 %v720_v58, %v719_v26  ;;  %v2599_v26 = vld [vmem:[#allocation2 + $0xe8] sm:$0xff]  }
 0x56d   :  { %2049 = vmatpush3.bf16.msra.mxu1 %v2599_v26 }
 0x56e   :  { %2045 = vmatmul.mubr.bf16.vlgmr.msra.gmra.mxu0 %v721_v36  ;;  %2050 = vmatprep.subr.bf16.mxu1 %v2926_v38 }
 0x56f   :  { %1100 = vmatpush1.bf16.msra.mxu0 %v2389_v7  ;;  %1119 = vmatprep.mubr.bf16.mxu0 %v2928_v33 }
 0x570   :  { %1101 = vmatprep.subr.bf16.mxu0 %v2396_v9 }
 0x573   :  { %1102 = vmatpush1.bf16.msra.mxu0 %v2399_v10 }
 0x574   :  { %2072 = vmatprep.subr.bf16.mxu0 %v2926_v38 }
 0x62e   :  { %v808_v22 = vpop.f32.mrf.mxu0 }
 0x62f   :  { %v809_v59 = vadd.f32 %v808_v22, %v2589_v31 }
 0x630   :  { %v2046_v60 = vpop.f32.mrf.mxu0 }
 0x631   :  { %v815_v7 = vadd.f32 %v809_v59, %v2531_v45 }
 0x632   :  { %v811_v58 = vpop.f32.mrf.mxu0 }
 0x633   :  { %v812_v9 = vadd.f32 %v811_v58, %v2589_v31  ;;  %v817_v10 = vsel %vm157_vm1, %v815_v7, 0.0 }
 0x634   :  { %818 = vadd.xlane.f32.xlu0 %v817_v10  ;;  %v2047_v41 = vpop.f32.mrf.mxu0 }
 0x635   :  { %v816_v42 = vadd.f32 %v812_v9, %v2533_v46  ;;  %v2602_v46 = vld [vmem:[#allocation2 + $0xe0] sm:$0xff]   ;;  %v2908_v9 = vsub.s32 3, %v2408_v14 }
 0x636   :  { %2051 = vmatpush3.bf16.msra.mxu1 %v2602_v46 }
 0x637   :  { %v820_v0 = vsel %vm157_vm1, %v816_v42, 0.0  ;;  %2056 = vmatprep.subr.bf16.mxu1 %v2926_v38 }
 0x638   :  { %821 = vadd.xlane.f32.xlu1 %v820_v0 }
 0x6bd   :  { %v819_v12 = vpop.xlane.xlu0 %818 }
 0x6be   :  { %v824_v6 = vmul.f32 0.03125, %v819_v12 }
 0x6c0   :  { %v826_v17 = vsub.f32 %v815_v7, %v824_v6 }
 0x6c1   :  { %v822_v23 = vpop.xlane.xlu1 %821 }
 0x6c2   :  { %v825_v40 = vmul.f32 0.03125, %v822_v23  ;;  %v828_v43 = vmul.f32 %v826_v17, %v826_v17  ;;  %v2616_v23 = vrot.slane %v2410_v16, %v2428_v27  ;;  %v2634_v27 = vld [vmem:[#allocation2 + $0x110] sm:$0xff]  }
 0x6c3   :  { %2933 = vst [vmem:[#allocation17_spill] sm:$0xff] %v2634_v27 }
 0x6c4   :  { %v827_v47 = vsub.f32 %v816_v42, %v825_v40  ;;  %v830_v45 = vsel %vm157_vm1, %v828_v43, 0.0  ;;  %v2611_v42 = vrot.slane %v2410_v16, %v2908_v9  ;;  %2931 = vst [vmem:[#allocation15_spill] sm:$0xff] %v2616_v23 }
 0x6c5   :  { %831 = vadd.xlane.f32.xlu0 %v830_v45 }
 0x6c6   :  { %v829_v30 = vmul.f32 %v827_v47, %v827_v47  ;;  %2930 = vst [vmem:[#allocation14_spill] sm:$0xff] %v2611_v42 }
 0x6c8   :  { %v833_v32 = vsel %vm157_vm1, %v829_v30, 0.0  ;;  %v2637_v30 = vld [vmem:[#allocation2 + $0x108] sm:$0xff]  }
 0x6c9   :  { %834 = vadd.xlane.f32.xlu1 %v833_v32  ;;  %2934 = vst [vmem:[#allocation18_spill] sm:$0xff] %v2637_v30  ;;  %v2641_v32 = vld [vmem:[#allocation2 + $0x100] sm:$0xff]  }
 0x6ca   :  { %2935 = vst [vmem:[#allocation19_spill] sm:$0xff] %v2641_v32 }
 0x74e   :  { %v832_v36 = vpop.xlane.xlu0 %831 }
 0x74f   :  { %v836_v22 = vmul.f32 0.03125, %v832_v36  ;;  %v2645_v36 = vld [vmem:[#allocation2 + $0xf8] sm:$0xff]  }
 0x750   :  { %2936 = vst [vmem:[#allocation20_spill] sm:$0xff] %v2645_v36 }
 0x751   :  { %v838_v59 = vadd.f32 1e-05, %v836_v22  ;;  %v2649_v22 = vld [vmem:[#allocation2 + $0xf0] sm:$0xff]  }
 0x752   :  { %v835_v60 = vpop.xlane.xlu1 %834  ;;  %2937 = vst [vmem:[#allocation21_spill] sm:$0xff] %v2649_v22 }
 0x753   :  { %2228 = vrsqrt.f32 %v838_v59  ;;  %v837_v7 = vmul.f32 0.03125, %v835_v60  ;;  %v859_v59 = vsub.s32 5, %v2408_v14 }
 0x755   :  { %v839_v58 = vadd.f32 1e-05, %v837_v7  ;;  %v2656_v60 = vrot.slane %v2410_v16, %v859_v59 }
 0x757   :  { %2230 = vrsqrt.f32 %v839_v58 }
 0x760   :  { %v2229_v10 = vpop.eup %2228 }
 0x761   :  { %v842_v41 = vmul.f32 %v2229_v10, %v826_v17 }
 0x763   :  { %v848_v6 = vmul.f32 %v2611_v42, %v842_v41 }
 0x764   :  { %v2231_v0 = vpop.eup %2230 }
 0x765   :  { %v843_v12 = vmul.f32 %v2231_v0, %v827_v47  ;;  %v2620_v43 = vadd.f32 %v2616_v23, %v848_v6  ;;  %v2630_v47 = vld [vmem:[#allocation2 + $0x118] sm:$0xff]  }
 0x766   :  { %2932 = vst [vmem:[#allocation16_spill] sm:$0xff] %v2630_v47 }
 0x767   :  { %v849_v40 = vmul.f32 %v2611_v42, %v843_v12 }
 0x769   :  { %v2623_v17 = vadd.f32 %v2616_v23, %v849_v40 }
 0x76b   :  { %v856_v45 = vpack.c.bf16 %v2623_v17, %v2620_v43 }
 0x76d   :  { %2053 = vmatmul.mubr.msk.bf16.vlgmr.msra.gmra.mxu1 %vm157_vm1, %v856_v45 }
 0x76e   :  { %2068 = vmatprep.mubr.msk.bf16.mxu1 %vm2342_vm0, %v2926_v38  ;;  %2057 = vmatpush3.bf16.msra.mxu1 %v2630_v47 }
 0x76f   :  { %2058 = vmatprep.subr.bf16.mxu1 %v2926_v38 }
 0x772   :  { %2059 = vmatpush3.bf16.msra.mxu1 %v2634_v27 }
 0x773   :  { %2060 = vmatprep.subr.bf16.mxu1 %v2926_v38 }
 0x776   :  { %2061 = vmatpush3.bf16.msra.mxu1 %v2637_v30 }
 0x777   :  { %2062 = vmatprep.subr.bf16.mxu1 %v2926_v38 }
 0x77a   :  { %2063 = vmatpush3.bf16.msra.mxu1 %v2641_v32 }
 0x77b   :  { %2064 = vmatprep.subr.bf16.mxu1 %v2926_v38 }
 0x77e   :  { %2065 = vmatpush3.bf16.msra.mxu1 %v2645_v36 }
 0x77f   :  { %2066 = vmatprep.subr.bf16.mxu1 %v2926_v38 }
 0x782   :  { %2067 = vmatpush3.bf16.msra.mxu1 %v2649_v22 }
 0x783   :  { %2080 = vmatprep.subr.bf16.mxu1 %v2926_v38 }
 0x82d   :  { %v910_v7 = vpop.f32.mrf.mxu1 }
 0x82e   :  { %v911_v58 = vadd.f32 %v910_v7, %v2656_v60 }
 0x82f   :  { %v2054_v10 = vpop.f32.mrf.mxu1 }
 0x830   :  { %v919_v41 = vmul.f32 0.044715, %v911_v58  ;;  %v917_v10 = vmul.f32 0.5, %v911_v58 }
 0x831   :  { %v913_v0 = vpop.f32.mrf.mxu1 }
 0x832   :  { %v921_v12 = vmul.f32 %v919_v41, %v911_v58  ;;  %v914_v6 = vadd.f32 %v913_v0, %v2656_v60 }
 0x833   :  { %v2055_v40 = vpop.f32.mrf.mxu1 }
 0x834   :  { %v923_v45 = vmul.f32 %v921_v12, %v911_v58  ;;  %v920_v9 = vmul.f32 0.044715, %v914_v6  ;;  %v918_v23 = vmul.f32 0.5, %v914_v6 }
 0x836   :  { %v925_v62 = vadd.f32 %v923_v45, %v911_v58  ;;  %v922_v22 = vmul.f32 %v920_v9, %v914_v6  ;;  %v938_v9 = vsub.s32 6, %v2408_v14 }
 0x838   :  { %v927_v36 = vmul.f32 0.7978846, %v925_v62  ;;  %v924_v32 = vmul.f32 %v922_v22, %v914_v6  ;;  %v2344_v62 = vmov 32  }
 0x839   :  { %2157 = vset.pattern.permute.xlu0 %v2344_v62  ;;  %2158 = vset.pattern.permute.xlu1 %v2344_v62 }
 0x83a   :  { %2232 = vtanh.f32 %v927_v36  ;;  %v926_v30 = vadd.f32 %v924_v32, %v914_v6 }
 0x83c   :  { %v928_v59 = vmul.f32 0.7978846, %v926_v30 }
 0x83e   :  { %2234 = vtanh.f32 %v928_v59 }
 0x847   :  { %v2233_v27 = vpop.eup %2232 }
 0x848   :  { %v931_v47 = vadd.f32 1.0, %v2233_v27  ;;  %v2667_v27 = vrot.slane %v2410_v16, %v938_v9 }
 0x84a   :  { %v933_v41 = vmul.f32 %v931_v47, %v917_v10 }
 0x84b   :  { %v2235_v7 = vpop.eup %2234 }
 0x84c   :  { %v932_v42 = vadd.f32 1.0, %v2235_v7 }
 0x84e   :  { %v934_v31 = vmul.f32 %v932_v42, %v918_v23 }
 0x850   :  { %v935_v0 = vpack.c.bf16 %v934_v31, %v933_v41 }
 0x852   :  { %2069 = vmatmul.mubr.msk.bf16.vlgmr.msra.gmra.mxu1 %vm976_vm4, %v935_v0 }
 0x853   :  { %2081 = vmatpush3.bf16.msra.mxu1 %v2442_v52  ;;  %2082 = vmatprep.mubr.msk.bf16.mxu1 %vm2342_vm0, %v2926_v38 }
 0x854   :  { %2086 = vmatprep.subr.bf16.mxu1 %v2926_v38 }
 0x912   :  { %v1014_v42 = vpop.f32.mrf.mxu1 }
 0x913   :  { %v1015_v31 = vadd.f32 %v1014_v42, %v2667_v27 }
 0x914   :  { %v2070_v23 = vpop.f32.mrf.mxu1 }
 0x915   :  { %v1021_v47 = vsub.f32 0.0, %v1015_v31 }
 0x916   :  { %v1017_v30 = vpop.f32.mrf.mxu1 }
 0x917   :  { %v1023_v52 = vmul.f32 1.442695, %v1021_v47  ;;  %v1018_v32 = vadd.f32 %v1017_v30, %v2667_v27 }
 0x918   :  { %v2071_v36 = vpop.f32.mrf.mxu1 }
 0x919   :  { %2236 = vpow2.f32 %v1023_v52  ;;  %v1022_v22 = vsub.f32 0.0, %v1018_v32 }
 0x91b   :  { %v1025_v58 = vmul.f32 1.442695, %v1022_v22 }
 0x91d   :  { %2238 = vpow2.f32 %v1025_v58 }
 0x926   :  { %v2237_v12 = vpop.eup %2236 }
 0x927   :  { %v1027_v6 = vadd.f32 1.0, %v2237_v12 }
 0x929   :  { %2240 = vrcp.f32 %v1027_v6 }
 0x92a   :  { %v2239_v40 = vpop.eup %2238 }
 0x92b   :  { %v1028_v45 = vadd.f32 1.0, %v2239_v40 }
 0x92d   :  { %2242 = vrcp.f32 %v1028_v45 }
 0x936   :  { %v2671_v59 = vpop.eup %2240 }
 0x937   :  { %1033 = vperm.xlu0 %2157, %v2671_v59   ;;  %v1043_v7 = vsub.f32 1.0, %v2671_v59 }
 0x939   :  { %1047 = vperm.xlu1 %2158, %v1043_v7  }
 0x93a   :  { %v2675_v10 = vpop.eup %2242 }
 0x93b   :  { %v1044_v41 = vsub.f32 1.0, %v2675_v10 }
 0x93d   :  { %1038 = vperm.xlu1 %2158, %v2675_v10  }
 0x941   :  { %1052 = vperm.xlu1 %2158, %v1044_v41  }
 0x9b2   :  { %v1034_v9 = vpop.permute.xlu0 %1033 }
 0x9b3   :  { %v1041_v47 = vmul.f32 %v1034_v9, %v2620_v43 }
 0x9b4   :  { %v1048_v0 = vpop.permute.xlu1 %1047 }
 0x9b5   :  { %v1055_v42 = vmul.f32 %v1048_v0, %v1015_v31 }
 0x9b7   :  { %v2681_v36 = vadd.f32 %v1055_v42, %v1041_v47 }
 0x9b8   :  { %v1039_v62 = vpop.permute.xlu1 %1038 }
 0x9b9   :  { %v1042_v30 = vmul.f32 %v1039_v62, %v2623_v17 }
 0x9bc   :  { %v1053_v23 = vpop.permute.xlu1 %1052 }
 0x9bd   :  { %v1056_v52 = vmul.f32 %v1053_v23, %v1018_v32 }
 0x9bf   :  { %v2683_v22 = vadd.f32 %v1056_v52, %v1042_v30 }
 0x9c1   :  { %v1083_v58 = vpack.c.bf16 %v2683_v22, %v2681_v36 }
 0x9c3   :  { %1874 = vmatmul.mubr.msk.bf16.vlgmr.msra.gmra.mxu0 %vm157_vm1, %v1083_v58 }
 0x9c4   :  { %2073 = vmatpush3.bf16.msra.mxu0 %v2391_v8  ;;  %2076 = vmatprep.mubr.msk.bf16.mxu0 %vm2342_vm0, %v2926_v38 }
 0x9c5   :  { %2074 = vmatprep.subr.bf16.mxu0 %v2926_v38 }
 0x9c8   :  { %2075 = vmatpush3.bf16.msra.mxu0 %v2401_v11 }
 0x9c9   :  { %1876 = vmatprep.subr.msk.bf16.mxu0 %vm405_vm3, %v2439_v50 }
 0x9cb   :  { %2077 = vmatmul.mubr.msk.bf16.vlgmr.msra.gmra.mxu0 %vm157_vm1, %v1083_v58 }
 0x9cc   :  { %1248 = vmatpush1.bf16.msra.mxu0 %v2447_v53  ;;  %1265 = vmatprep.mubr.bf16.mxu0 %v2928_v33 }
 0x9cd   :  { %1951 = vmatprep.subr.bf16.mxu0 %v2452_v54 }
 0xa83   :  { %v1121_v43 = vpop.f32.mrf.mxu0 }
 0xa85   :  { %v1123_v8 = vpop.f32.mrf.mxu0 }
 0xa87   :  { %v1125_v17 = vpop.f32.mrf.mxu0 }
 0xa89   :  { %v1127_v31 = vpop.f32.mrf.mxu0 }
 0xa8b   :  { %v1164_v32 = vpop.f32.mrf.mxu0 }
 0xa8c   :  { %v1165_v12 = vadd.f32 %v1164_v32, %v2431_v29 }
 0xa8d   :  { %v2078_v6 = vpop.f32.mrf.mxu0 }
 0xa8e   :  { %v1207_v11 = vsel %vm370_vm2, %v1165_v12, -inf }
 0xa8f   :  { %1208 = vmax.xlane.f32.xlu1 %v1207_v11  ;;  %v1167_v50 = vpop.f32.mrf.mxu0 }
 0xa90   :  { %v1168_v40 = vadd.f32 %v1167_v50, %v2431_v29 }
 0xa91   :  { %v2079_v45 = vpop.f32.mrf.mxu0 }
 0xa92   :  { %v1210_v53 = vsel %vm370_vm2, %v1168_v40, -inf }
 0xa93   :  { %1211 = vmax.xlane.f32.xlu0 %v1210_v53 }
 0xb18   :  { %v1209_v33 = vpop.xlane.xlu1 %1208 }
 0xb19   :  { %v1213_v54 = vsub.f32 %v1165_v12, %v1209_v33 }
 0xb1b   :  { %v1215_v7 = vmul.f32 1.442695, %v1213_v54 }
 0xb1c   :  { %v1212_v41 = vpop.xlane.xlu0 %1211 }
 0xb1d   :  { %2244 = vpow2.f32 %v1215_v7  ;;  %v1214_v0 = vsub.f32 %v1168_v40, %v1212_v41 }
 0xb1f   :  { %v1217_v62 = vmul.f32 1.442695, %v1214_v0 }
 0xb21   :  { %2246 = vpow2.f32 %v1217_v62 }
 0xb2a   :  { %v2245_v9 = vpop.eup %2244 }
 0xb2b   :  { %v1219_v42 = vsel %vm370_vm2, %v2245_v9, 0.0 }
 0xb2c   :  { %1220 = vadd.xlane.f32.xlu1 %v1219_v42 }
 0xb2e   :  { %v2247_v23 = vpop.eup %2246 }
 0xb2f   :  { %v1222_v47 = vsel %vm370_vm2, %v2247_v23, 0.0 }
 0xb30   :  { %1223 = vadd.xlane.f32.xlu1 %v1222_v47 }
 0xbb5   :  { %v1221_v29 = vpop.xlane.xlu1 %1220 }
 0xbb6   :  { %2248 = vrcp.f32 %v1221_v29 }
 0xbb9   :  { %v1224_v30 = vpop.xlane.xlu1 %1223 }
 0xbba   :  { %2250 = vrcp.f32 %v1224_v30 }
 0xbc3   :  { %v2249_v52 = vpop.eup %2248 }
 0xbc4   :  { %v2705_v32 = vmul.f32 %v2249_v52, %v2245_v9 }
 0xbc7   :  { %v2251_v58 = vpop.eup %2250 }
 0xbc8   :  { %v2707_v12 = vmul.f32 %v2251_v58, %v2247_v23 }
 0xbca   :  { %v1229_v6 = vpack.c.bf16 %v2707_v12, %v2705_v32 }
 0xbcc   :  { %1877 = vmatmul.mubr.msk.bf16.vlgmr.msra.gmra.mxu0 %vm370_vm2, %v1229_v6  ;;  %2083 = vmatmul.mubr.msk.bf16.vlgmr.msra.gmra.mxu1 %vm370_vm2, %v1229_v6 }
 0xbcd   :  { %1952 = vmatpush3.bf16.msra.mxu0 %v2459_v61  ;;  %2087 = vmatpush3.bf16.msra.mxu1 %v2523_v37  ;;  %v1122_v61 = vadd.f32 %v1121_v43, %v2515_v35 }
 0xbce   :  { %1953 = vmatprep.subr.bf16.mxu0 %v2463_v63  ;;  %2088 = vmatprep.subr.bf16.mxu1 %v2926_v38  ;;  %v1126_v63 = vadd.f32 %v1125_v17, %v2515_v35 }
 0xbcf   :  { %2090 = vmatprep.mubr.msk.bf16.mxu1 %vm2342_vm0, %v2926_v38  ;;  %v1171_v0 = vmul.f32 0.5, %v1122_v61 }
 0xbd0   :  { %v1173_v9 = vmul.f32 0.5, %v1126_v63 }
 0xbd1   :  { %1954 = vmatpush3.bf16.msra.mxu0 %v2468_v1  ;;  %2089 = vmatpush3.bf16.msra.mxu1 %v2527_v39  ;;  %v1124_v1 = vadd.f32 %v1123_v8, %v2512_v34 }
 0xbd2   :  { %1955 = vmatprep.subr.bf16.mxu0 %v2473_v2  ;;  %2094 = vmatprep.subr.bf16.mxu1 %v2926_v38  ;;  %v1128_v2 = vadd.f32 %v1127_v31, %v2512_v34 }
 0xbd3   :  { %v1172_v30 = vmul.f32 0.5, %v1124_v1 }
 0xbd4   :  { %v1174_v58 = vmul.f32 0.5, %v1128_v2 }
 0xbd5   :  { %1956 = vmatpush3.bf16.msra.mxu0 %v2476_v3  ;;  %v1175_v3 = vmul.f32 0.044715, %v1122_v61 }
 0xbd6   :  { %1957 = vmatprep.subr.bf16.mxu0 %v2479_v4  ;;  %v1177_v4 = vmul.f32 0.044715, %v1126_v63 }
 0xbd9   :  { %1958 = vmatpush3.bf16.msra.mxu0 %v2482_v5  ;;  %v1176_v5 = vmul.f32 0.044715, %v1124_v1 }
 0xbda   :  { %1959 = vmatprep.subr.bf16.mxu0 %v2485_v13  ;;  %v1178_v13 = vmul.f32 0.044715, %v1128_v2 }
 0xbdd   :  { %1960 = vmatpush3.bf16.msra.mxu0 %v2488_v15  ;;  %v1179_v15 = vmul.f32 %v1175_v3, %v1122_v61 }
 0xbde   :  { %1961 = vmatprep.subr.bf16.mxu0 %v2492_v18  ;;  %v1181_v18 = vmul.f32 %v1177_v4, %v1126_v63 }
 0xbe1   :  { %1962 = vmatpush3.bf16.msra.mxu0 %v2494_v19  ;;  %v1180_v19 = vmul.f32 %v1176_v5, %v1124_v1 }
 0xbe2   :  { %1963 = vmatprep.subr.bf16.mxu0 %v2498_v20  ;;  %v1182_v20 = vmul.f32 %v1178_v13, %v1128_v2 }
 0xbe4   :  { %v1186_v37 = vmul.f32 %v1182_v20, %v1128_v2 }
 0xbe5   :  { %1964 = vmatpush3.bf16.msra.mxu0 %v2500_v21  ;;  %v1183_v21 = vmul.f32 %v1179_v15, %v1122_v61 }
 0xbe6   :  { %1965 = vmatprep.subr.bf16.mxu0 %v2504_v24  ;;  %v1185_v24 = vmul.f32 %v1181_v18, %v1126_v63  ;;  %v1190_v35 = vadd.f32 %v1186_v37, %v1128_v2 }
 0xbe7   :  { %v1187_v39 = vadd.f32 %v1183_v21, %v1122_v61 }
 0xbe8   :  { %v1189_v43 = vadd.f32 %v1185_v24, %v1126_v63  ;;  %v1194_v34 = vmul.f32 0.7978846, %v1190_v35 }
 0xbe9   :  { %1966 = vmatpush3.bf16.msra.mxu0 %v2506_v25  ;;  %v1184_v25 = vmul.f32 %v1180_v19, %v1124_v1  ;;  %v1191_v17 = vmul.f32 0.7978846, %v1187_v39 }
 0xbea   :  { %2114 = vmatprep.subr.bf16.mxu0 %v2926_v38  ;;  %v1193_v8 = vmul.f32 0.7978846, %v1189_v43 }
 0xbeb   :  { %v1188_v11 = vadd.f32 %v1184_v25, %v1124_v1  ;;  %2252 = vtanh.f32 %v1191_v17 }
 0xbec   :  { %2254 = vtanh.f32 %v1193_v8 }
 0xbed   :  { %v1192_v50 = vmul.f32 0.7978846, %v1188_v11 }
 0xbef   :  { %2256 = vtanh.f32 %v1192_v50 }
 0xbf0   :  { %2258 = vtanh.f32 %v1194_v34 }
 0xbf8   :  { %v2253_v31 = vpop.eup %2252 }
 0xbf9   :  { %v2255_v40 = vpop.eup %2254  ;;  %v1199_v33 = vadd.f32 1.0, %v2253_v31 }
 0xbfa   :  { %v1201_v54 = vadd.f32 1.0, %v2255_v40 }
 0xbfb   :  { %v1203_v29 = vmul.f32 %v1199_v33, %v1171_v0 }
 0xbfc   :  { %v2257_v45 = vpop.eup %2256  ;;  %v1205_v52 = vmul.f32 %v1201_v54, %v1173_v9 }
 0xbfd   :  { %v2259_v53 = vpop.eup %2258  ;;  %v1200_v62 = vadd.f32 1.0, %v2257_v45 }
 0xbfe   :  { %v1202_v42 = vadd.f32 1.0, %v2259_v53 }
 0xbff   :  { %v1204_v5 = vmul.f32 %v1200_v62, %v1172_v30 }
 0xc00   :  { %v1206_v15 = vmul.f32 %v1202_v42, %v1174_v58 }
 0xc8c   :  { %v1267_v7 = vpop.f32.mrf.mxu0  ;;  %v1310_v41 = vpop.f32.mrf.mxu1 }
 0xc8d   :  { %v1317_v4 = vmul.f32 %v1267_v7, %v1203_v29 }
 0xc8e   :  { %v1269_v23 = vpop.f32.mrf.mxu0  ;;  %v2084_v47 = vpop.f32.mrf.mxu1 }
 0xc8f   :  { %v1318_v20 = vmul.f32 %v1269_v23, %v1204_v5  ;;  %v2939_v47 = vld [vmem:[#allocation13_spill] sm:$0xff] }
 0xc90   :  { %v1271_v6 = vpop.f32.mrf.mxu0  ;;  %v1313_v3 = vpop.f32.mrf.mxu1 }
 0xc91   :  { %v1319_v13 = vmul.f32 %v1271_v6, %v1205_v52 }
 0xc92   :  { %v1273_v18 = vpop.f32.mrf.mxu0  ;;  %v2085_v19 = vpop.f32.mrf.mxu1 }
 0xc93   :  { %v1321_v21 = vpack.c.bf16 %v1319_v13, %v1317_v4  ;;  %v1320_v61 = vmul.f32 %v1273_v18, %v1206_v15 }
 0xc95   :  { %v1322_v24 = vpack.c.bf16 %v1320_v61, %v1318_v20 }
 0xc97   :  { %1355 = vmatprep.mubr.bf16.mxu0 %v1322_v24 }
 0xc98   :  { %1356 = vmatmul.mubr.bf16.vlgmr.msra.gmra.mxu0 %v1321_v21 }
 0xc99   :  { %2115 = vmatpush3.bf16.msra.mxu0 %v2599_v26  ;;  %2118 = vmatprep.mubr.msk.bf16.mxu0 %vm2342_vm0, %v2926_v38 }
 0xc9a   :  { %2116 = vmatprep.subr.bf16.mxu0 %v2926_v38 }
 0xc9d   :  { %2117 = vmatpush3.bf16.msra.mxu0 %v2602_v46 }
 0xc9e   :  { %2122 = vmatprep.subr.bf16.mxu0 %v2926_v38 }
 0xd58   :  { %v1967_v63 = vpop.f32.mrf.mxu0 }
 0xd5a   :  { %v1968_v1 = vpop.f32.mrf.mxu0 }
 0xd5b   :  { %v1969_v25 = vadd.f32 %v1968_v1, %v1967_v63 }
 0xd5c   :  { %v1970_v2 = vpop.f32.mrf.mxu0 }
 0xd5d   :  { %v1358_v43 = vadd.f32 %v1969_v25, %v1310_v41 }
 0xd5e   :  { %v1971_v37 = vpop.f32.mrf.mxu0 }
 0xd5f   :  { %v1972_v39 = vadd.f32 %v1971_v37, %v1970_v2 }
 0xd61   :  { %v1361_v11 = vadd.f32 %v1972_v39, %v1313_v3 }
 0xd63   :  { %v1364_v35 = vpack.c.bf16 %v1361_v11, %v1358_v43 }
 0xd65   :  { %2091 = vmatmul.mubr.msk.bf16.vlgmr.msra.gmra.mxu1 %vm157_vm1, %v1364_v35 }
 0xd66   :  { %2095 = vmatpush3.bf16.msra.mxu1 %v2540_v48  ;;  %2110 = vmatprep.mubr.msk.bf16.mxu1 %vm2342_vm0, %v2926_v38  ;;  %v2938_v48 = vld [vmem:[#allocation12_spill] sm:$0xff] }
 0xd67   :  { %2096 = vmatprep.subr.bf16.mxu1 %v2926_v38 }
 0xd6a   :  { %2097 = vmatpush3.bf16.msra.mxu1 %v2544_v49 }
 0xd6b   :  { %2098 = vmatprep.subr.bf16.mxu1 %v2926_v38 }
 0xd6e   :  { %2099 = vmatpush3.bf16.msra.mxu1 %v2548_v44 }
 0xd6f   :  { %2100 = vmatprep.subr.bf16.mxu1 %v2926_v38 }
 0xd72   :  { %2101 = vmatpush3.bf16.msra.mxu1 %v2552_v51 }
 0xd73   :  { %2102 = vmatprep.subr.bf16.mxu1 %v2926_v38 }
 0xd76   :  { %2103 = vmatpush3.bf16.msra.mxu1 %v2555_v55 }
 0xd77   :  { %2104 = vmatprep.subr.bf16.mxu1 %v2926_v38 }
 0xd7a   :  { %2105 = vmatpush3.bf16.msra.mxu1 %v2559_v56 }
 0xd7b   :  { %2106 = vmatprep.subr.bf16.mxu1 %v2926_v38 }
 0xd7e   :  { %2107 = vmatpush3.bf16.msra.mxu1 %v2563_v57 }
 0xd7f   :  { %2108 = vmatprep.subr.bf16.mxu1 %v2926_v38 }
 0xd82   :  { %2109 = vmatpush3.bf16.msra.mxu1 %v2938_v48 }
 0xd83   :  { %2138 = vmatprep.subr.bf16.mxu1 %v2926_v38 }
 0xe25   :  { %v1402_v49 = vpop.f32.mrf.mxu1 }
 0xe26   :  { %v1403_v44 = vadd.f32 %v1402_v49, %v2576_v28 }
 0xe27   :  { %v2092_v51 = vpop.f32.mrf.mxu1 }
 0xe28   :  { %v1411_v26 = vmul.f32 0.044715, %v1403_v44  ;;  %v1409_v41 = vmul.f32 0.5, %v1403_v44 }
 0xe29   :  { %v1405_v55 = vpop.f32.mrf.mxu1 }
 0xe2a   :  { %v1413_v46 = vmul.f32 %v1411_v26, %v1403_v44  ;;  %v1406_v17 = vadd.f32 %v1405_v55, %v2576_v28  ;;  %v2940_v26 = vld [vmem:[#allocation14_spill] sm:$0xff] }
 0xe2b   :  { %v2093_v56 = vpop.f32.mrf.mxu1 }
 0xe2c   :  { %v1415_v8 = vmul.f32 %v1413_v46, %v1403_v44  ;;  %v1412_v50 = vmul.f32 0.044715, %v1406_v17  ;;  %v1410_v0 = vmul.f32 0.5, %v1406_v17 }
 0xe2e   :  { %v1417_v34 = vadd.f32 %v1415_v8, %v1403_v44  ;;  %v1414_v57 = vmul.f32 %v1412_v50, %v1406_v17 }
 0xe30   :  { %v1419_v31 = vmul.f32 0.7978846, %v1417_v34  ;;  %v1416_v40 = vmul.f32 %v1414_v57, %v1406_v17  ;;  %v2942_v34 = vld [vmem:[#allocation16_spill] sm:$0xff]  ;;  %v2943_v57 = vld [vmem:[#allocation17_spill] sm:$0xff] }
 0xe32   :  { %2260 = vtanh.f32 %v1419_v31  ;;  %v1418_v45 = vadd.f32 %v1416_v40, %v1406_v17  ;;  %v2941_v17 = vld [vmem:[#allocation15_spill] sm:$0xff]  ;;  %v2944_v31 = vld [vmem:[#allocation18_spill] sm:$0xff] }
 0xe33   :  { %v2945_v40 = vld [vmem:[#allocation19_spill] sm:$0xff] }
 0xe34   :  { %v1420_v53 = vmul.f32 0.7978846, %v1418_v45  ;;  %v2946_v45 = vld [vmem:[#allocation20_spill] sm:$0xff] }
 0xe36   :  { %2262 = vtanh.f32 %v1420_v53  ;;  %v2947_v53 = vld [vmem:[#allocation21_spill] sm:$0xff] }
 0xe3f   :  { %v2261_v33 = vpop.eup %2260 }
 0xe40   :  { %v1423_v54 = vadd.f32 1.0, %v2261_v33 }
 0xe42   :  { %v1425_v9 = vmul.f32 %v1423_v54, %v1409_v41 }
 0xe43   :  { %v2263_v7 = vpop.eup %2262 }
 0xe44   :  { %v1424_v62 = vadd.f32 1.0, %v2263_v7 }
 0xe46   :  { %v1426_v42 = vmul.f32 %v1424_v62, %v1410_v0 }
 0xe48   :  { %v1427_v28 = vpack.c.bf16 %v1426_v42, %v1425_v9 }
 0xe4a   :  { %2111 = vmatmul.mubr.bf16.vlgmr.msra.gmra.mxu1 %v1427_v28 }
 0xe4b   :  { %2142 = vmatprep.mubr.msk.bf16.mxu1 %vm2342_vm0, %v2926_v38 }
 0xf0a   :  { %v1462_v23 = vpop.f32.mrf.mxu1 }
 0xf0b   :  { %v1463_v29 = vadd.f32 %v1462_v23, %v2939_v47 }
 0xf0c   :  { %v2112_v30 = vpop.f32.mrf.mxu1 }
 0xf0d   :  { %v1469_v52 = vadd.f32 %v1463_v29, %v1358_v43 }
 0xf0e   :  { %v1465_v58 = vpop.f32.mrf.mxu1 }
 0xf0f   :  { %v1466_v6 = vadd.f32 %v1465_v58, %v2939_v47  ;;  %v1471_v3 = vsel %vm157_vm1, %v1469_v52, 0.0 }
 0xf10   :  { %1472 = vadd.xlane.f32.xlu1 %v1471_v3  ;;  %v2113_v4 = vpop.f32.mrf.mxu1 }
 0xf11   :  { %v1470_v5 = vadd.f32 %v1466_v6, %v1361_v11 }
 0xf13   :  { %v1474_v13 = vsel %vm157_vm1, %v1470_v5, 0.0 }
 0xf14   :  { %1475 = vadd.xlane.f32.xlu1 %v1474_v13 }
 0xf99   :  { %v1473_v15 = vpop.xlane.xlu1 %1472 }
 0xf9a   :  { %v1477_v18 = vmul.f32 0.03125, %v1473_v15 }
 0xf9c   :  { %v1479_v19 = vsub.f32 %v1469_v52, %v1477_v18 }
 0xf9d   :  { %v1476_v20 = vpop.xlane.xlu1 %1475 }
 0xf9e   :  { %v1478_v21 = vmul.f32 0.03125, %v1476_v20  ;;  %v1481_v61 = vmul.f32 %v1479_v19, %v1479_v19 }
 0xfa0   :  { %v1480_v24 = vsub.f32 %v1470_v5, %v1478_v21  ;;  %v1483_v63 = vsel %vm157_vm1, %v1481_v61, 0.0 }
 0xfa1   :  { %1484 = vadd.xlane.f32.xlu0 %v1483_v63 }
 0xfa2   :  { %v1482_v1 = vmul.f32 %v1480_v24, %v1480_v24 }
 0xfa4   :  { %v1486_v2 = vsel %vm157_vm1, %v1482_v1, 0.0 }
 0xfa5   :  { %1487 = vadd.xlane.f32.xlu1 %v1486_v2 }
0x102a   :  { %v1485_v25 = vpop.xlane.xlu0 %1484 }
0x102b   :  { %v1489_v37 = vmul.f32 0.03125, %v1485_v25 }
0x102d   :  { %v1491_v39 = vadd.f32 1e-05, %v1489_v37 }
0x102e   :  { %v1488_v43 = vpop.xlane.xlu1 %1487 }
0x102f   :  { %2264 = vrsqrt.f32 %v1491_v39  ;;  %v1490_v11 = vmul.f32 0.03125, %v1488_v43 }
0x1031   :  { %v1492_v35 = vadd.f32 1e-05, %v1490_v11 }
0x1033   :  { %2266 = vrsqrt.f32 %v1492_v35 }
0x103c   :  { %v2265_v48 = vpop.eup %2264 }
0x103d   :  { %v1495_v49 = vmul.f32 %v2265_v48, %v1479_v19 }
0x103f   :  { %v1497_v55 = vmul.f32 %v1495_v49, %v2940_v26 }
0x1040   :  { %v2267_v44 = vpop.eup %2266 }
0x1041   :  { %v1496_v51 = vmul.f32 %v2267_v44, %v1480_v24  ;;  %v2777_v56 = vadd.f32 %v1497_v55, %v2941_v17 }
0x1043   :  { %v1498_v46 = vmul.f32 %v1496_v51, %v2940_v26 }
0x1045   :  { %v2780_v8 = vadd.f32 %v1498_v46, %v2941_v17 }
0x1047   :  { %v1501_v50 = vpack.c.bf16 %v2780_v8, %v2777_v56 }
0x1049   :  { %2119 = vmatmul.mubr.msk.bf16.vlgmr.msra.gmra.mxu0 %vm157_vm1, %v1501_v50 }
0x104a   :  { %2123 = vmatpush3.bf16.msra.mxu0 %v2942_v34  ;;  %2134 = vmatprep.mubr.msk.bf16.mxu0 %vm2342_vm0, %v2926_v38 }
0x104b   :  { %2124 = vmatprep.subr.bf16.mxu0 %v2926_v38 }
0x104e   :  { %2125 = vmatpush3.bf16.msra.mxu0 %v2943_v57 }
0x104f   :  { %2126 = vmatprep.subr.bf16.mxu0 %v2926_v38 }
0x1052   :  { %2127 = vmatpush3.bf16.msra.mxu0 %v2944_v31 }
0x1053   :  { %2128 = vmatprep.subr.bf16.mxu0 %v2926_v38 }
0x1056   :  { %2129 = vmatpush3.bf16.msra.mxu0 %v2945_v40 }
0x1057   :  { %2130 = vmatprep.subr.bf16.mxu0 %v2926_v38 }
0x105a   :  { %2131 = vmatpush3.bf16.msra.mxu0 %v2946_v45 }
0x105b   :  { %2132 = vmatprep.subr.bf16.mxu0 %v2926_v38 }
0x105e   :  { %2133 = vmatpush3.bf16.msra.mxu0 %v2947_v53 }
0x1109   :  { %v1539_v33 = vpop.f32.mrf.mxu0 }
0x110a   :  { %v1540_v54 = vadd.f32 %v1539_v33, %v2656_v60 }
0x110b   :  { %v2120_v7 = vpop.f32.mrf.mxu0 }
0x110c   :  { %v1548_v41 = vmul.f32 0.044715, %v1540_v54  ;;  %v1546_v13 = vmul.f32 0.5, %v1540_v54 }
0x110d   :  { %v1542_v0 = vpop.f32.mrf.mxu0 }
0x110e   :  { %v1550_v62 = vmul.f32 %v1548_v41, %v1540_v54  ;;  %v1543_v9 = vadd.f32 %v1542_v0, %v2656_v60 }
0x110f   :  { %v2121_v42 = vpop.f32.mrf.mxu0 }
0x1110   :  { %v1552_v28 = vmul.f32 %v1550_v62, %v1540_v54  ;;  %v1549_v23 = vmul.f32 0.044715, %v1543_v9  ;;  %v1547_v15 = vmul.f32 0.5, %v1543_v9 }
0x1112   :  { %v1554_v47 = vadd.f32 %v1552_v28, %v1540_v54  ;;  %v1551_v29 = vmul.f32 %v1549_v23, %v1543_v9 }
0x1114   :  { %v1556_v30 = vmul.f32 0.7978846, %v1554_v47  ;;  %v1553_v52 = vmul.f32 %v1551_v29, %v1543_v9  ;;  %v2206_v47 = vld [vmem:[#allocation2 + $0x128] sm:$0xff]   ;;  %v2207_v29 = vld [vmem:[#allocation2 + $0x120] sm:$0xff]  }
0x1115   :  { %2139 = vmatpush3.bf16.msra.mxu1 %v2206_v47 }
0x1116   :  { %2268 = vtanh.f32 %v1556_v30  ;;  %v1555_v58 = vadd.f32 %v1553_v52, %v1543_v9  ;;  %2140 = vmatprep.subr.bf16.mxu1 %v2926_v38  ;;  %v2948_v38 = vsub.s32 0, %v2408_v14 }
0x1118   :  { %v1557_v6 = vmul.f32 0.7978846, %v1555_v58 }
0x1119   :  { %2141 = vmatpush3.bf16.msra.mxu1 %v2207_v29 }
0x111a   :  { %2270 = vtanh.f32 %v1557_v6 }
0x1123   :  { %v2269_v3 = vpop.eup %2268 }
0x1124   :  { %v1560_v4 = vadd.f32 1.0, %v2269_v3 }
0x1126   :  { %v1562_v19 = vmul.f32 %v1560_v4, %v1546_v13  ;;  %v2288_v13 = vld [vmem:[#allocation2 + $0x130] sm:$0xff]  }
0x1127   :  { %v2271_v5 = vpop.eup %2270 }
0x1128   :  { %v1561_v18 = vadd.f32 1.0, %v2271_v5  ;;  %v1698_v5 = vsub.s32 7, %v2408_v14 }
0x112a   :  { %v1563_v20 = vmul.f32 %v1561_v18, %v1547_v15  ;;  %v2819_v15 = vunpack.c.h.bf16 %v2288_v13  ;;  %v1699_v18 = vrot.slane %v2410_v16, %v1698_v5 }
0x112c   :  { %v1564_v60 = vpack.c.bf16 %v1563_v20, %v1562_v19 }
0x112e   :  { %2135 = vmatmul.mubr.msk.bf16.vlgmr.msra.gmra.mxu0 %vm976_vm4, %v1564_v60 }
0x11ee   :  { %v1602_v21 = vpop.f32.mrf.mxu0 }
0x11ef   :  { %v1603_v61 = vadd.f32 %v1602_v21, %v2667_v27  ;;  %v1705_v21 = vrot.slane %v2819_v15, %v2948_v38 }
0x11f0   :  { %v2136_v24 = vpop.f32.mrf.mxu0 }
0x11f1   :  { %v1609_v63 = vsub.f32 0.0, %v1603_v61 }
0x11f2   :  { %v1605_v1 = vpop.f32.mrf.mxu0 }
0x11f3   :  { %v1611_v2 = vmul.f32 1.442695, %v1609_v63  ;;  %v1606_v25 = vadd.f32 %v1605_v1, %v2667_v27 }
0x11f4   :  { %v2137_v37 = vpop.f32.mrf.mxu0 }
0x11f5   :  { %2272 = vpow2.f32 %v1611_v2  ;;  %v1610_v39 = vsub.f32 0.0, %v1606_v25  ;;  %v2949_v37 = vsub.s32 1, %v2408_v14 }
0x11f7   :  { %v1613_v43 = vmul.f32 1.442695, %v1610_v39  ;;  %v1712_v39 = vrot.slane %v2819_v15, %v2949_v37 }
0x11f9   :  { %2274 = vpow2.f32 %v1613_v43 }
0x1202   :  { %v2273_v11 = vpop.eup %2272 }
0x1203   :  { %v1615_v35 = vadd.f32 1.0, %v2273_v11 }
0x1205   :  { %2276 = vrcp.f32 %v1615_v35  ;;  %v2289_v35 = vld [vmem:[%s2893_s0] sm:$0xff] }
0x1206   :  { %v2275_v48 = vpop.eup %2274 }
0x1207   :  { %v1616_v49 = vadd.f32 1.0, %v2275_v48 }
0x1209   :  { %2278 = vrcp.f32 %v1616_v49 }
0x1212   :  { %v2803_v44 = vpop.eup %2276 }
0x1213   :  { %1621 = vperm.xlu0 %2157, %v2803_v44   ;;  %v1631_v26 = vsub.f32 1.0, %v2803_v44 }
0x1216   :  { %v2806_v51 = vpop.eup %2278 }
0x1217   :  { %1626 = vperm.xlu1 %2158, %v2806_v51   ;;  %v1632_v27 = vsub.f32 1.0, %v2806_v51 }
0x1219   :  { %1640 = vperm.xlu0 %2157, %v1632_v27  }
0x121b   :  { %1635 = vperm.xlu1 %2158, %v1631_v26  }
0x128e   :  { %v1622_v55 = vpop.permute.xlu0 %1621 }
0x128f   :  { %v1629_v31 = vmul.f32 %v1622_v55, %v2777_v56 }
0x1292   :  { %v1627_v46 = vpop.permute.xlu1 %1626 }
0x1293   :  { %v1630_v50 = vmul.f32 %v1627_v46, %v2780_v8  ;;  %v2290_v46 = vld [vmem:[%s2893_s0 + $0x8] sm:$0xff] }
0x1294   :  { %v1641_v17 = vpop.permute.xlu0 %1640 }
0x1295   :  { %v1644_v34 = vmul.f32 %v1641_v17, %v1606_v25 }
0x1296   :  { %v1636_v57 = vpop.permute.xlu1 %1635 }
0x1297   :  { %v1643_v40 = vmul.f32 %v1636_v57, %v1603_v61  ;;  %v1646_v45 = vadd.f32 %v1644_v34, %v1630_v50  ;;  %v2950_v34 = vld [vmem:[#allocation11_spill] sm:$0xff]  ;;  %v2951_v57 = vld [vmem:[#allocation10_spill] sm:$0xff] }
0x1299   :  { %v1673_v53 = vsel %vm157_vm1, %v1646_v45, 0.0  ;;  %v1645_v33 = vadd.f32 %v1643_v40, %v1629_v31 }
0x129a   :  { %1674 = vadd.xlane.f32.xlu0 %v1673_v53 }
0x129b   :  { %v1670_v54 = vsel %vm157_vm1, %v1645_v33, 0.0 }
0x129c   :  { %1671 = vadd.xlane.f32.xlu1 %v1670_v54 }
0x1323   :  { %v1675_v7 = vpop.xlane.xlu0 %1674 }
0x1324   :  { %v1677_v41 = vmul.f32 0.03125, %v1675_v7 }
0x1325   :  { %v1672_v0 = vpop.xlane.xlu1 %1671 }
0x1326   :  { %v1679_v62 = vsub.f32 %v1646_v45, %v1677_v41  ;;  %v1676_v9 = vmul.f32 0.03125, %v1672_v0 }
0x1328   :  { %v1678_v42 = vsub.f32 %v1645_v33, %v1676_v9  ;;  %v1681_v8 = vmul.f32 %v1679_v62, %v1679_v62 }
0x132a   :  { %v1685_v28 = vsel %vm157_vm1, %v1681_v8, 0.0  ;;  %v1680_v23 = vmul.f32 %v1678_v42, %v1678_v42 }
0x132b   :  { %1686 = vadd.xlane.f32.xlu1 %v1685_v28 }
0x132c   :  { %v1682_v56 = vsel %vm157_vm1, %v1680_v23, 0.0 }
0x132d   :  { %1683 = vadd.xlane.f32.xlu0 %v1682_v56 }
0x13b4   :  { %v1687_v30 = vpop.xlane.xlu1 %1686 }
0x13b5   :  { %v1689_v52 = vmul.f32 0.03125, %v1687_v30 }
0x13b6   :  { %v1684_v58 = vpop.xlane.xlu0 %1683 }
0x13b7   :  { %v1691_v6 = vadd.f32 1e-05, %v1689_v52  ;;  %v1688_v3 = vmul.f32 0.03125, %v1684_v58  ;;  %v2953_v52 = vld [vmem:[#allocation9_spill] sm:$0xff] }
0x13b9   :  { %2280 = vrsqrt.f32 %v1691_v6  ;;  %v1690_v4 = vadd.f32 1e-05, %v1688_v3 }
0x13bb   :  { %2282 = vrsqrt.f32 %v1690_v4 }
0x13c6   :  { %v2281_v19 = vpop.eup %2280 }
0x13c7   :  { %v1695_v20 = vmul.f32 %v2281_v19, %v1679_v62 }
0x13c8   :  { %v2283_v60 = vpop.eup %2282 }
0x13c9   :  { %v1694_v61 = vmul.f32 %v2283_v60, %v1678_v42  ;;  %v1701_v24 = vmul.f32 %v1699_v18, %v1695_v20 }
0x13cb   :  { %v1700_v63 = vmul.f32 %v1699_v18, %v1694_v61  ;;  %v1707_v2 = vadd.f32 %v1705_v21, %v1701_v24  ;;  %v2955_v24 = vsub.s32 3, %v2408_v14 }
0x13cd   :  { %v1706_v1 = vadd.f32 %v1705_v21, %v1700_v63  ;;  %v1806_v63 = vrot.slane %v2819_v15, %v2955_v24 }
0x13cf   :  { %v1708_v25 = vpack.c.bf16 %v1707_v2, %v1706_v1 }
0x13d1   :  { %2143 = vmatmul.mubr.msk.bf16.vlgmr.msra.gmra.mxu1 %vm157_vm1, %v1708_v25 }
0x1491   :  { %v1762_v16 = vpop.f32.mrf.mxu1 }
0x1492   :  { %v1763_v43 = vadd.f32 %v1762_v16, %v1712_v39 }
0x1493   :  { %v2144_v11 = vpop.f32.mrf.mxu1 }
0x1494   :  { %v1769_v48 = vadd.f32 %v2289_v35, %v1763_v43 }
0x1495   :  { %v1765_v49 = vpop.f32.mrf.mxu1 }
0x1496   :  { %v1766_v27 = vadd.f32 %v1765_v49, %v1712_v39  ;;  %v1771_v26 = vsel %vm157_vm1, %v1769_v48, 0.0 }
0x1497   :  { %1772 = vadd.xlane.f32.xlu0 %v1771_v26  ;;  %v2145_v55 = vpop.f32.mrf.mxu1 }
0x1498   :  { %v1770_v17 = vadd.f32 %v2290_v46, %v1766_v27 }
0x149a   :  { %v1774_v50 = vsel %vm157_vm1, %v1770_v17, 0.0 }
0x149b   :  { %1775 = vadd.xlane.f32.xlu1 %v1774_v50 }
0x14ac   :  { %1063 = vrot.lane.b32.xlu1 %v2950_v34, %s2345_s5 }
0x14ad   :  { %1061 = vrot.lane.b32.xlu0 %v2951_v57, %s2345_s5 }
0x14b0   :  { %1649 = vrot.lane.b32.xlu1 %v2705_v32, %s2345_s5 }
0x14b1   :  { %1651 = vrot.lane.b32.xlu0 %v2707_v12, %s2345_s5 }
0x14b4   :  { %1067 = vrot.lane.b32.xlu1 %v2671_v59, %s2337_s16  ;;  %v2952_v59 = vld [vmem:[#allocation8_spill] sm:$0xff] }
0x1520   :  { %v1773_v31 = vpop.xlane.xlu0 %1772 }
0x1521   :  { %v1777_v40 = vmul.f32 0.03125, %v1773_v31 }
0x1523   :  { %v1779_v45 = vsub.f32 %v1769_v48, %v1777_v40 }
0x1524   :  { %v1776_v53 = vpop.xlane.xlu1 %1775  ;;  %v1062_v12 = vpop.permute.xlu0 %1061 }
0x1525   :  { %v1778_v33 = vmul.f32 0.03125, %v1776_v53  ;;  %v1781_v54 = vmul.f32 %v1779_v45, %v1779_v45  ;;  %v1073_v42 = vsel %vm157_vm1, %v2952_v59, %v1062_v12 }
0x1527   :  { %v1780_v7 = vsub.f32 %v1770_v17, %v1778_v33  ;;  %v1783_v41 = vsel %vm157_vm1, %v1781_v54, 0.0 }
0x1528   :  { %1784 = vadd.xlane.f32.xlu0 %v1783_v41  ;;  %v1064_v0 = vpop.permute.xlu1 %1063  ;;  %v1652_v56 = vpop.permute.xlu0 %1651 }
0x1529   :  { %v1782_v62 = vmul.f32 %v1780_v7, %v1780_v7  ;;  %v1074_v58 = vsel %vm157_vm1, %v2953_v52, %v1064_v0 }
0x152b   :  { %v1786_v9 = vsel %vm157_vm1, %v1782_v62, 0.0 }
0x152c   :  { %1787 = vadd.xlane.f32.xlu1 %v1786_v9  ;;  %v1650_v32 = vpop.permute.xlu1 %1649 }
0x152d   :  { %v1661_v13 = vsel %vm157_vm1, %v2681_v36, %v1650_v32  ;;  %v2954_v36 = vsub.s32 2, %v2408_v14 }
0x1530   :  { %v1068_v8 = vpop.permute.xlu1 %1067 }
0x1531   :  { %v1076_v28 = vsel %vm1075_vm5, %v1073_v42, %v1068_v8 }
0x1532   :  { %v1079_v23 = vsel %vm1078_vm6, %v1076_v28, 0.0 }
0x1533   :  { %1081 = vst [vmem:[%s2896_s3] sm:$0xff] %v1079_v23 }
0x153d   :  { %1655 = vrot.lane.b32.xlu1 %v2803_v44, %s2337_s16 }
0x153e   :  { %1069 = vrot.lane.b32.xlu0 %v2675_v10, %s2337_s16 }
0x1542   :  { %1657 = vrot.lane.b32.xlu0 %v2806_v51, %s2337_s16  ;;  %v1662_v51 = vsel %vm157_vm1, %v2683_v22, %v1652_v56  ;;  %v1800_v22 = vrot.slane %v2819_v15, %v2954_v36 }
0x15b1   :  { %v1785_v47 = vpop.xlane.xlu0 %1784 }
0x15b2   :  { %v1789_v29 = vmul.f32 0.03125, %v1785_v47 }
0x15b4   :  { %v1791_v30 = vadd.f32 1e-05, %v1789_v29 }
0x15b5   :  { %v1070_v6 = vpop.permute.xlu0 %1069  ;;  %v1788_v3 = vpop.xlane.xlu1 %1787 }
0x15b6   :  { %2284 = vrsqrt.f32 %v1791_v30  ;;  %v1077_v4 = vsel %vm1075_vm5, %v1074_v58, %v1070_v6  ;;  %v1790_v5 = vmul.f32 0.03125, %v1788_v3 }
0x15b7   :  { %v1080_v44 = vsel %vm1078_vm6, %v1077_v4, 0.0 }
0x15b8   :  { %1082 = vst [vmem:[%s2896_s3 + $0x8] sm:$0xff] %v1080_v44  ;;  %v1792_v10 = vadd.f32 1e-05, %v1790_v5 }
0x15b9   :  { %v1658_v18 = vpop.permute.xlu0 %1657  ;;  %v1656_v19 = vpop.permute.xlu1 %1655 }
0x15ba   :  { %2286 = vrsqrt.f32 %v1792_v10  ;;  %v1664_v20 = vsel %vm1075_vm5, %v1662_v51, %v1658_v18  ;;  %v1663_v60 = vsel %vm1075_vm5, %v1661_v13, %v1656_v19 }
0x15bb   :  { %v1666_v38 = vsel %vm1078_vm6, %v1664_v20, 0.0  ;;  %v1665_v21 = vsel %vm1078_vm6, %v1663_v60, 0.0 }
0x15bc   :  { %1883 = vst [vmem:[%s2896_s3 + $0x18] sm:$0xff] %v1666_v38  ;;  %1882 = vst [vmem:[%s2896_s3 + $0x10] sm:$0xff] %v1665_v21 }
0x15c3   :  { %v2285_v61 = vpop.eup %2284 }
0x15c4   :  { %v1795_v1 = vmul.f32 %v2285_v61, %v1779_v45 }
0x15c6   :  { %v1801_v2 = vmul.f32 %v1800_v22, %v1795_v1 }
0x15c7   :  { %v2287_v25 = vpop.eup %2286 }
0x15c8   :  { %v1807_v37 = vadd.f32 %v1806_v63, %v1801_v2  ;;  %v1796_v39 = vmul.f32 %v2287_v25, %v1780_v7 }
0x15ca   :  { %v1809_v16 = vsel %vm157_vm1, %v1807_v37, 0.0  ;;  %v1802_v43 = vmul.f32 %v1800_v22, %v1796_v39 }
0x15cb   :  { %1887 = vst [vmem:[%s2896_s3 + $0x20] sm:$0xff] %v1809_v16 }
0x15cc   :  { %v1808_v11 = vadd.f32 %v1806_v63, %v1802_v43 }
0x15ce   :  { %v1810_v35 = vsel %vm157_vm1, %v1808_v11, 0.0 }
0x15cf   :  { %1888 = vst [vmem:[%s2896_s3 + $0x28] sm:$0xff] %v1810_v35 }
0x15d0   :  { %1818 = vsyncpa [#allocation3], 1 }
0x15d1   :  { %1819 = vsyncpa [#allocation5], 1 }

</bundles_post_ra>
